<compile_context>
chip_gen: v7x
topology: tpu7x:2x2x1
jax: 0.10.0
libtpu: 0.0.40
codegen_flags: <defaults>
</compile_context>

<pallas_src>
import math

import jax
import jax.numpy as jnp
from jax.experimental import pallas as pl
from jax.experimental.pallas import tpu as pltpu

HIDDEN = 256        # hidden width of the module
MAX_TM = 512        # max batch-tile rows per grid step
LANE = 128          # TPU lane width (output feature padding target)
SUBLANE = 8         # sublane alignment for the batch-tile rows


def _round_up(n, m):
    return ((n + m - 1) // m) * m


def _choose_batch_tile(batch, max_tile=MAX_TM, align=SUBLANE):
    """Largest tile <= max_tile that keeps padding waste < `align` rows."""
    batch = max(batch, 1)
    steps = -(-batch // max_tile)            # ceil(batch / max_tile)
    rows = -(-batch // steps)                # ceil(batch / steps)
    return _round_up(rows, align)


def _mlp_kernel(x_ref, w1_ref, b1_ref, w2_ref, b2_ref, w3_ref, b3_ref, o_ref):
    # One (TM, in) activation tile against resident bf16 weights.
    # bf16 inputs to each MXU dot, f32 accumulate; bias + ReLU in f32 on the VPU.
    x = x_ref[...].astype(jnp.bfloat16)
    h1 = jnp.dot(x, w1_ref[...], preferred_element_type=jnp.float32) + b1_ref[...]
    h1 = jnp.maximum(h1, 0.0)
    h2 = (
        jnp.dot(h1.astype(jnp.bfloat16), w2_ref[...], preferred_element_type=jnp.float32)
        + b2_ref[...]
    )
    h2 = jnp.maximum(h2, 0.0)
    o_ref[...] = (
        jnp.dot(h2.astype(jnp.bfloat16), w3_ref[...], preferred_element_type=jnp.float32)
        + b3_ref[...]
    )


def hockey_ai_forward(x, params, output_size):
    """Forward pass of HockeyAI as a batch-tiled Pallas kernel.

    x: (B, input_size) float32
    params: dict with
        w1 (in, 256) bf16, b1 (1, 256) f32,
        w2 (256, 256) bf16, b2 (1, 256) f32,
        w3 (256, out_pad) bf16, b3 (1, out_pad) f32   (out_pad = ceil(out/128)*128)
    Returns (B, output_size) float32.
    """
    w1, b1 = params["w1"], params["b1"]
    w2, b2 = params["w2"], params["b2"]
    w3, b3 = params["w3"], params["b3"]

    B, in_size = x.shape
    hidden = w1.shape[1]
    out_pad = w3.shape[1]

    # Adaptive batch tile (multiple of 8, <= MAX_TM); pad batch up to it.
    tm = _choose_batch_tile(B)
    b_pad = _round_up(max(B, 1), tm)
    if b_pad != B:
        x = jnp.pad(x, ((0, b_pad - B), (0, 0)))

    grid = (b_pad // tm,)

    out = pl.pallas_call(
        _mlp_kernel,
        out_shape=jax.ShapeDtypeStruct((b_pad, out_pad), jnp.float32),
        grid_spec=pltpu.PrefetchScalarGridSpec(
            num_scalar_prefetch=0,
            grid=grid,
            in_specs=[
                # activation stream: one batch tile per grid step
                pl.BlockSpec((tm, in_size), lambda i: (i, 0)),
                # weights / biases: resident (same block every step)
                pl.BlockSpec((in_size, hidden), lambda i: (0, 0)),
                pl.BlockSpec((1, hidden), lambda i: (0, 0)),
                pl.BlockSpec((hidden, hidden), lambda i: (0, 0)),
                pl.BlockSpec((1, hidden), lambda i: (0, 0)),
                pl.BlockSpec((hidden, out_pad), lambda i: (0, 0)),
                pl.BlockSpec((1, out_pad), lambda i: (0, 0)),
            ],
            out_specs=pl.BlockSpec((tm, out_pad), lambda i: (i, 0)),
        ),
        compiler_params=pltpu.CompilerParams(
            dimension_semantics=("parallel",),
        ),
    )(x, w1, b1, w2, b2, w3, b3)

    return out[:B, :output_size]


def init_params(key, input_size, output_size, hidden=HIDDEN):
    """Deterministic init mirroring nn.Linear default (uniform +/- 1/sqrt(fan_in)).

    Weights stored transposed vs. PyTorch ((in, out)) and in bf16; biases f32.
    The last layer is zero-padded on the output axis to a multiple of 128 lanes.
    """
    keys = jax.random.split(key, 6)
    out_pad = _round_up(output_size, LANE)

    def linear_init(kw, kb, fan_in, fan_out, pad_out_to=None):
        bound = 1.0 / math.sqrt(fan_in)
        w = jax.random.uniform(kw, (fan_in, fan_out), jnp.float32, -bound, bound)
        b = jax.random.uniform(kb, (1, fan_out), jnp.float32, -bound, bound)
        if pad_out_to is not None and pad_out_to != fan_out:
            w = jnp.pad(w, ((0, 0), (0, pad_out_to - fan_out)))
            b = jnp.pad(b, ((0, 0), (0, pad_out_to - fan_out)))
        return w.astype(jnp.bfloat16), b  # bf16 weights, f32 bias

    w1, b1 = linear_init(keys[0], keys[1], input_size, hidden)
    w2, b2 = linear_init(keys[2], keys[3], hidden, hidden)
    w3, b3 = linear_init(keys[4], keys[5], hidden, output_size, pad_out_to=out_pad)
    return dict(w1=w1, b1=b1, w2=w2, b2=b2, w3=w3, b3=b3)


def reference_forward(x, p, output_size):
    """Pure-JAX reference with the same bf16-in / f32-accumulate casts."""
    h1 = jnp.maximum(
        jnp.dot(x.astype(jnp.bfloat16), p["w1"], preferred_element_type=jnp.float32)
        + p["b1"],
        0.0,
    )
    h2 = jnp.maximum(
        jnp.dot(h1.astype(jnp.bfloat16), p["w2"], preferred_element_type=jnp.float32)
        + p["b2"],
        0.0,
    )
    out = (
        jnp.dot(h2.astype(jnp.bfloat16), p["w3"], preferred_element_type=jnp.float32)
        + p["b3"]
    )
    return out[:, :output_size]


if __name__ == "__main__":
    key = jax.random.PRNGKey(0)
    k_x, k_p = jax.random.split(key)

    batch = 600        # -> adaptive tile 304 rows, 2-step grid, 8 padded rows
    input_size = 32    # flattened hockey game state
    output_size = 8    # action logits

    x = jax.random.normal(k_x, (batch, input_size), dtype=jnp.float32)
    params = init_params(k_p, input_size, output_size)

    out = hockey_ai_forward(x, params, output_size)
    out = jax.block_until_ready(out)

    ref = reference_forward(x, params, output_size)
    assert out.shape == (batch, output_size)
    assert jnp.allclose(out, ref, atol=1e-3, rtol=1e-3)

    print("KERNEL_OK")
</pallas_src>

<mosaic_0001>
module attributes {stable_mosaic.version = 11 : i64} {
  func.func @_mlp_kernel(%arg0: i32, %arg1: memref<304x32xf32, #tpu.memory_space<vmem>>, %arg2: memref<32x256xbf16, #tpu.memory_space<vmem>>, %arg3: memref<1x256xf32, #tpu.memory_space<vmem>>, %arg4: memref<256x256xbf16, #tpu.memory_space<vmem>>, %arg5: memref<1x256xf32, #tpu.memory_space<vmem>>, %arg6: memref<256x128xbf16, #tpu.memory_space<vmem>>, %arg7: memref<1x128xf32, #tpu.memory_space<vmem>>, %arg8: memref<304x128xf32, #tpu.memory_space<vmem>>) attributes {dimension_semantics = [#tpu.dimension_semantics<parallel>], iteration_bounds = array<i64: 2>, scalar_prefetch = 0 : i64, scratch_operands = 0 : i64, tpu.core_type = #tpu.core_type<tc>, window_params = [{transform_indices = @transform_0, window_bounds = array<i64: 304, 32>}, {pipeline_mode = #tpu.pipeline_mode<synchronous>, transform_indices = @transform_1, window_bounds = array<i64: 32, 256>}, {pipeline_mode = #tpu.pipeline_mode<synchronous>, transform_indices = @transform_2, window_bounds = array<i64: 1, 256>}, {pipeline_mode = #tpu.pipeline_mode<synchronous>, transform_indices = @transform_3, window_bounds = array<i64: 256, 256>}, {pipeline_mode = #tpu.pipeline_mode<synchronous>, transform_indices = @transform_4, window_bounds = array<i64: 1, 256>}, {pipeline_mode = #tpu.pipeline_mode<synchronous>, transform_indices = @transform_5, window_bounds = array<i64: 256, 128>}, {pipeline_mode = #tpu.pipeline_mode<synchronous>, transform_indices = @transform_6, window_bounds = array<i64: 1, 128>}, {transform_indices = @transform_7, window_bounds = array<i64: 304, 128>}]} {
    %c0 = arith.constant 0 : index
    %c0_0 = arith.constant 0 : index
    %0 = vector.load %arg1[%c0, %c0_0] : memref<304x32xf32, #tpu.memory_space<vmem>>, vector<304x32xf32>
    %1 = arith.truncf %0 : vector<304x32xf32> to vector<304x32xbf16>
    %c0_1 = arith.constant 0 : index
    %c0_2 = arith.constant 0 : index
    %2 = vector.load %arg2[%c0_1, %c0_2] : memref<32x256xbf16, #tpu.memory_space<vmem>>, vector<32x256xbf16>
    %cst = arith.constant dense<0.000000e+00> : vector<304x256xf32>
    %3 = tpu.matmul %1, %2, %cst {dimension_numbers = #tpu.dot_dimension_numbers<[1], [0], [0], [1], [0, 0, 1, 1], [], []>} : vector<304x32xbf16>, vector<32x256xbf16>, vector<304x256xf32> -> vector<304x256xf32>
    %c0_3 = arith.constant 0 : index
    %c0_4 = arith.constant 0 : index
    %4 = vector.load %arg3[%c0_3, %c0_4] : memref<1x256xf32, #tpu.memory_space<vmem>>, vector<1x256xf32>
    %5 = vector.broadcast %4 : vector<1x256xf32> to vector<304x256xf32>
    %6 = arith.addf %3, %5 : vector<304x256xf32>
    %cst_5 = arith.constant 0.000000e+00 : f32
    %7 = vector.broadcast %cst_5 : f32 to vector<304x256xf32>
    %8 = arith.maximumf %6, %7 : vector<304x256xf32>
    %9 = arith.truncf %8 : vector<304x256xf32> to vector<304x256xbf16>
    %c0_6 = arith.constant 0 : index
    %c0_7 = arith.constant 0 : index
    %10 = vector.load %arg4[%c0_6, %c0_7] : memref<256x256xbf16, #tpu.memory_space<vmem>>, vector<256x256xbf16>
    %cst_8 = arith.constant dense<0.000000e+00> : vector<304x256xf32>
    %11 = tpu.matmul %9, %10, %cst_8 {dimension_numbers = #tpu.dot_dimension_numbers<[1], [0], [0], [1], [0, 0, 1, 1], [], []>} : vector<304x256xbf16>, vector<256x256xbf16>, vector<304x256xf32> -> vector<304x256xf32>
    %c0_9 = arith.constant 0 : index
    %c0_10 = arith.constant 0 : index
    %12 = vector.load %arg5[%c0_9, %c0_10] : memref<1x256xf32, #tpu.memory_space<vmem>>, vector<1x256xf32>
    %13 = vector.broadcast %12 : vector<1x256xf32> to vector<304x256xf32>
    %14 = arith.addf %11, %13 : vector<304x256xf32>
    %cst_11 = arith.constant 0.000000e+00 : f32
    %15 = vector.broadcast %cst_11 : f32 to vector<304x256xf32>
    %16 = arith.maximumf %14, %15 : vector<304x256xf32>
    %17 = arith.truncf %16 : vector<304x256xf32> to vector<304x256xbf16>
    %c0_12 = arith.constant 0 : index
    %c0_13 = arith.constant 0 : index
    %18 = vector.load %arg6[%c0_12, %c0_13] : memref<256x128xbf16, #tpu.memory_space<vmem>>, vector<256x128xbf16>
    %cst_14 = arith.constant dense<0.000000e+00> : vector<304x128xf32>
    %19 = tpu.matmul %17, %18, %cst_14 {dimension_numbers = #tpu.dot_dimension_numbers<[1], [0], [0], [1], [0, 0, 1, 1], [], []>} : vector<304x256xbf16>, vector<256x128xbf16>, vector<304x128xf32> -> vector<304x128xf32>
    %c0_15 = arith.constant 0 : index
    %c0_16 = arith.constant 0 : index
    %20 = vector.load %arg7[%c0_15, %c0_16] : memref<1x128xf32, #tpu.memory_space<vmem>>, vector<1x128xf32>
    %21 = vector.broadcast %20 : vector<1x128xf32> to vector<304x128xf32>
    %22 = arith.addf %19, %21 : vector<304x128xf32>
    %c0_17 = arith.constant 0 : index
    %c0_18 = arith.constant 0 : index
    %23 = vector.load %arg8[%c0_17, %c0_18] : memref<304x128xf32, #tpu.memory_space<vmem>>, vector<304x128xf32>
    tpu.vector_store %arg8[%c0_17, %c0_18], %22 {strides = array<i32>} : memref<304x128xf32, #tpu.memory_space<vmem>>, vector<304x128xf32>,
    return
  }
  func.func @transform_0(%arg0: i32) -> (i32, i32) {
    %c0_i32 = arith.constant 0 : i32
    %c0_i32_0 = arith.constant 0 : i32
    return %arg0, %c0_i32 : i32, i32
  }
  func.func @transform_1(%arg0: i32) -> (i32, i32) {
    %c0_i32 = arith.constant 0 : i32
    %c0_i32_0 = arith.constant 0 : i32
    %c0_i32_1 = arith.constant 0 : i32
    return %c0_i32, %c0_i32_0 : i32, i32
  }
  func.func @transform_2(%arg0: i32) -> (i32, i32) {
    %c0_i32 = arith.constant 0 : i32
    %c0_i32_0 = arith.constant 0 : i32
    %c0_i32_1 = arith.constant 0 : i32
    return %c0_i32, %c0_i32_0 : i32, i32
  }
  func.func @transform_3(%arg0: i32) -> (i32, i32) {
    %c0_i32 = arith.constant 0 : i32
    %c0_i32_0 = arith.constant 0 : i32
    %c0_i32_1 = arith.constant 0 : i32
    return %c0_i32, %c0_i32_0 : i32, i32
  }
  func.func @transform_4(%arg0: i32) -> (i32, i32) {
    %c0_i32 = arith.constant 0 : i32
    %c0_i32_0 = arith.constant 0 : i32
    %c0_i32_1 = arith.constant 0 : i32
    return %c0_i32, %c0_i32_0 : i32, i32
  }
  func.func @transform_5(%arg0: i32) -> (i32, i32) {
    %c0_i32 = arith.constant 0 : i32
    %c0_i32_0 = arith.constant 0 : i32
    %c0_i32_1 = arith.constant 0 : i32
    return %c0_i32, %c0_i32_0 : i32, i32
  }
  func.func @transform_6(%arg0: i32) -> (i32, i32) {
    %c0_i32 = arith.constant 0 : i32
    %c0_i32_0 = arith.constant 0 : i32
    %c0_i32_1 = arith.constant 0 : i32
    return %c0_i32, %c0_i32_0 : i32, i32
  }
  func.func @transform_7(%arg0: i32) -> (i32, i32) {
    %c0_i32 = arith.constant 0 : i32
    %c0_i32_0 = arith.constant 0 : i32
    return %arg0, %c0_i32 : i32, i32
  }
}

</mosaic_0001>

<bundles_post_ra>
// kernel: tpu_custom_call.1
= control target key start
LH: loop header
LB: loop body
LE: loop exit
PB: predicated region body
PF: predicated region fallthrough
CT: control target
= control target key end

     0   :  { %12 = vsyncpa [#allocation3], 0  ;;  %s2710_s0 = inlined_call_operand.vmem [shape: f32[608,32], index: 0, kind: input, shape index: {}]   ;;  %s2711_s1 = inlined_call_operand.vmem [shape: bf16[32,256], index: 1, kind: input, shape index: {}]   ;;  %s2712_s2 = inlined_call_operand.vmem [shape: f32[1,256], index: 2, kind: input, shape index: {}]   ;;  %s2713_s3 = inlined_call_operand.vmem [shape: bf16[256,256], index: 3, kind: input, shape index: {}]   ;;  %s2714_s4 = inlined_call_operand.vmem [shape: f32[1,256], index: 4, kind: input, shape index: {}]   ;;  %s2715_s5 = inlined_call_operand.vmem [shape: bf16[256,128], index: 5, kind: input, shape index: {}]   ;;  %s2716_s6 = inlined_call_operand.vmem [shape: f32[1,128], index: 6, kind: input, shape index: {}]   ;;  %s2717_s7 = inlined_call_operand.hbm [shape: f32[608,128], index: 7, kind: output, shape index: {}]  }
   0x1   :  { %14 = vsyncpa [#allocation3 + $0x1], 0  ;;  %s2050_s24 = smov 0   ;;  %s2052_s25 = smov 0  }
   0x2   :  { %s2054_s26 = smov 0   ;;  %s2056_s27 = smov 0  }
   0x3 LB: > { %s2071_s28 = sadd.s32 4294967295, %s2004_s27   ;;  %s1744_s29 = sadd.s32 4294967294, %s2004_s27   ;;  %s2004_s27 = sphi %s2056_s27, %s2723_s27   ;;  %s2000_s26 = sphi %s2054_s26, %s2722_s26   ;;  %s1996_s25 = sphi %s2052_s25, %s2721_s25   ;;  %s1992_s24 = sphi %s2050_s24, %s2720_s24  }
   0x4   : > { %s2075_s30 = sadd.s32 1, %s2004_s27   ;;  %s179_s8 = sadd.s32 1, %s2000_s26 }
   0x5   : > { %s176_s9 = ssub.s32 %s2004_s27, %s2075_s30  ;;  %p189_p0 = scmp.ne.s32.totalorder %s2000_s26, %s1996_s25 }
   0x6   : > { %p177_p1 = scmp.eq.s32.totalorder %s176_s9, 0  ;;  %p190_p2 = scmp.eq.s32.totalorder %s2071_s28, 1 }
   0x7   : > { %p195_p3 = scmp.ne.s32.totalorder %s1996_s25, %s1992_s24  ;;  %p196_p4 = scmp.eq.s32.totalorder %s1744_s29, 1 }
   0x8   : > { %s2086_s10 = scalar_select %p177_p1, %s2000_s26, %s179_s8  }
   0x9   : > { %p2088_p5 = por %p190_p2, %p189_p0  ;;  %p2092_p6 = por %p196_p4, %p195_p3 }
   0xa   : > { %p1747_p7 = scmp.ge.s32.totalorder %s2004_s27, 1  ;;  %p241_p8 = scmp.lt.s32.totalorder %s2004_s27, 3 }
   0xc   : > { %p242_p9 = pnand %p1747_p7, %p241_p8 }
   0xd   : > { %v1872_v0 = vld [vmem:[%s2711_s1 + $0x4] ss:$8 sps:$4 sm:$0xff] (!%p242_p9)   ;;  %s273_s15 = smul.u32 (!%p242_p9), 38, %s2071_s28  ;;  %v1874_v1 = vld [vmem:[%s2711_s1] ss:$8 sps:$4 sm:$0xff] (!%p242_p9)   ;;  %v2006_v2 = vmov (!%p242_p9), 0  }
   0xe   : > { %245 = sbr.rel (%p242_p9) target bundleno = 846 (0x34e), region = 48  ;;  %464 = vmatprep.mubr.bf16.mxu0 (!%p242_p9), %v2006_v2  ;;  %564 = vmatprep.mubr.bf16.mxu1 (!%p242_p9), %v2006_v2  ;;  %v1875_v3 = vld [vmem:[%s2711_s1 + $0x14] ss:$8 sps:$4 sm:$0xff] (!%p242_p9)   ;;  %v1877_v4 = vld [vmem:[%s2711_s1 + $0x10] ss:$8 sps:$4 sm:$0xff] (!%p242_p9)   ;;  %vm374_vm0 = vcmask (!%p242_p9), 261120  }
   0xf   : > { %432 = vmatprep.subr.bf16.mxu0 (!%p242_p9), %v1872_v0  ;;  %p274_p10 = scmp.lt.s32.totalorder (!%p242_p9), %s273_s15, 75  ;;  %1825 = vmatprep.subr.bf16.mxu1 (!%p242_p9), %v1872_v0  ;;  %v1880_v5 = vld [vmem:[%s2713_s3 + $0x4] ss:$8 sps:$4 sm:$0xff] (!%p242_p9)   ;;  %v1878_v15 = vld [vmem:[%s2713_s3] ss:$8 sps:$4 sm:$0xff] (!%p242_p9)   ;;  %s270_s18 = sand.u32 (!%p242_p9), 1, %s1996_s25  }
  0x10   : > { %433 = vmatpush1.bf16.msra.mxu0 (!%p242_p9), %v1874_v1  ;;  %1827 = vmatpush1.bf16.msra.mxu1 (!%p242_p9), %v1874_v1  ;;  %v1883_v16 = vld [vmem:[%s2713_s3 + $0x14] ss:$8 sps:$4 sm:$0xff] (!%p242_p9)   ;;  %v1881_v19 = vld [vmem:[%s2713_s3 + $0x10] ss:$8 sps:$4 sm:$0xff] (!%p242_p9)   ;;  %v1886_v22 = vld [vmem:[%s2713_s3 + $0x24] ss:$8 sps:$4 sm:$0xff] (!%p242_p9)  }
  0x11   : > { %434 = vmatprep.subr.bf16.mxu0 (!%p242_p9), %v1875_v3  ;;  %1826 = vmatprep.subr.bf16.mxu1 (!%p242_p9), %v1875_v3  ;;  %v1884_v25 = vld [vmem:[%s2713_s3 + $0x20] ss:$8 sps:$4 sm:$0xff] (!%p242_p9)   ;;  %v1889_v26 = vld [vmem:[%s2713_s3 + $0x34] ss:$8 sps:$4 sm:$0xff] (!%p242_p9)   ;;  %v1887_v28 = vld [vmem:[%s2713_s3 + $0x30] ss:$8 sps:$4 sm:$0xff] (!%p242_p9)  }
  0x12   : > { %v1892_v32 = vld [vmem:[%s2713_s3 + $0x44] ss:$8 sps:$4 sm:$0xff] (!%p242_p9)   ;;  %v1890_v35 = vld [vmem:[%s2713_s3 + $0x40] ss:$8 sps:$4 sm:$0xff] (!%p242_p9)   ;;  %v1895_v38 = vld [vmem:[%s2713_s3 + $0x54] ss:$8 sps:$4 sm:$0xff] (!%p242_p9)  }
  0x13   : > { %v1893_v41 = vld [vmem:[%s2713_s3 + $0x50] ss:$8 sps:$4 sm:$0xff] (!%p242_p9)   ;;  %v1898_v42 = vld [vmem:[%s2713_s3 + $0x64] ss:$8 sps:$4 sm:$0xff] (!%p242_p9)   ;;  %v1896_v44 = vld [vmem:[%s2713_s3 + $0x60] ss:$8 sps:$4 sm:$0xff] (!%p242_p9)  }
  0x14   : > { %435 = vmatpush1.bf16.msra.mxu0 (!%p242_p9), %v1877_v4  ;;  %1828 = vmatpush1.bf16.msra.mxu1 (!%p242_p9), %v1877_v4  ;;  %v1901_v46 = vld [vmem:[%s2713_s3 + $0x74] ss:$8 sps:$4 sm:$0xff] (!%p242_p9)   ;;  %v1899_v51 = vld [vmem:[%s2713_s3 + $0x70] ss:$8 sps:$4 sm:$0xff] (!%p242_p9)   ;;  %v1904_v52 = vld [vmem:[%s2713_s3 + $0x84] ss:$8 sps:$4 sm:$0xff] (!%p242_p9)  }
  0x15   : > { %s2725_s15 = smov (!%p274_p10, %s273_s15), 75  ;;  %973 = vmatprep.subr.bf16.mxu1 %v1880_v5  ;;  %1445 = vmatprep.subr.bf16.mxu0 %v2006_v2  ;;  %v1902_v55 = vld [vmem:[%s2713_s3 + $0x80] ss:$8 sps:$4 sm:$0xff]   ;;  %v1907_v56 = vld [vmem:[%s2713_s3 + $0x94] ss:$8 sps:$4 sm:$0xff]   ;;  %s1829_s19 = smul.u32 304, %s270_s18 }
  0x16   : > { %s1748_s29 = sshll.u32 %s2725_s15, 3  ;;  %v1905_v61 = vld [vmem:[%s2713_s3 + $0x90] ss:$8 sps:$4 sm:$0xff]   ;;  %v1910_v62 = vld [vmem:[%s2713_s3 + $0xa4] ss:$8 sps:$4 sm:$0xff]   ;;  %s1824_s22 = smul.u32 4864, %s2071_s28 }
  0x17   : > { %s2119_s13 = scalar_lea.vmem %s2710_s0, %s1748_s29  ;;  %v1908_v1 = vld [vmem:[%s2713_s3 + $0xa0] ss:$8 sps:$4 sm:$0xff]   ;;  %v1913_v3 = vld [vmem:[%s2713_s3 + $0xb4] ss:$8 sps:$4 sm:$0xff]   ;;  %s2669_s28 = scalar_lea.sflag [#allocation3], %s270_s18 }
  0x18   : > { %v281_v6 = vld [vmem:[%s2119_s13] sm:$0xff]  ;;  %v282_v7 = vld [vmem:[%s2119_s13 + $0x8] sm:$0xff]  ;;  %v283_v9 = vld [vmem:[%s2119_s13 + $0x10] sm:$0xff]  ;;  %s2660_s9 = scalar_lea.hbm %s2717_s7, %s1824_s22  ;;  %s2007_s15 = smov [#allocation2]  }
  0x19   : > { %v319_v8 = vpack.c.bf16 %v282_v7, %v281_v6  ;;  %v284_v10 = vld [vmem:[%s2119_s13 + $0x18] sm:$0xff]  ;;  %v301_v11 = vld [vmem:[%s2119_s13 + $0xa0] sm:$0xff]  ;;  %v302_v13 = vld [vmem:[%s2119_s13 + $0xa8] sm:$0xff]  ;;  %s1946_s16 = sshll.u32 %s2007_s15, 4  ;;  %s1947_s16 = int_to_ptr.vmem [resolvable:$false] %s1946_s16 }
  0x1a   : > { %v320_v12 = vpack.c.bf16 %v284_v10, %v283_v9  ;;  %v329_v14 = vpack.c.bf16 %v302_v13, %v301_v11  ;;  %v303_v17 = vld [vmem:[%s2119_s13 + $0xb0] sm:$0xff]  ;;  %v304_v18 = vld [vmem:[%s2119_s13 + $0xb8] sm:$0xff]  ;;  %v285_v20 = vld [vmem:[%s2119_s13 + $0x20] sm:$0xff]  ;;  %s1948_s17 = scalar_lea.vmem %s1947_s16, 9728 }
  0x1b   : > { %1753 = vmatmul.mubr.msk.bf16.vlgmr.msra.gmra.mrb[0].mxu0 %vm374_vm0, %v319_v8  ;;  %v286_v21 = vld [vmem:[%s2119_s13 + $0x28] sm:$0xff]  ;;  %v330_v23 = vpack.c.bf16 %v304_v18, %v303_v17  ;;  %v305_v27 = vld [vmem:[%s2119_s13 + $0xc0] sm:$0xff]  ;;  %v287_v30 = vld [vmem:[%s2119_s13 + $0x30] sm:$0xff] }
  0x1c   : > { %474 = vmatprep.mubr.bf16.mxu0 %v2006_v2  ;;  %1763 = vmatmul.mubr.msk.bf16.vlgmr.msra.gmra.mrb[0].mxu1 %vm374_vm0, %v329_v14  ;;  %v321_v24 = vpack.c.bf16 %v286_v21, %v285_v20  ;;  %v306_v29 = vld [vmem:[%s2119_s13 + $0xc8] sm:$0xff]  ;;  %v288_v31 = vld [vmem:[%s2119_s13 + $0x38] sm:$0xff]  ;;  %v307_v36 = vld [vmem:[%s2119_s13 + $0xd0] sm:$0xff] }
  0x1d   : > { %574 = vmatprep.mubr.bf16.mxu1 %v2006_v2  ;;  %974 = vmatpush1.bf16.msra.mxu1 %v1878_v15  ;;  %v331_v33 = vpack.c.bf16 %v306_v29, %v305_v27  ;;  %v322_v34 = vpack.c.bf16 %v288_v31, %v287_v30  ;;  %v308_v37 = vld [vmem:[%s2119_s13 + $0xd8] sm:$0xff]  ;;  %v289_v39 = vld [vmem:[%s2119_s13 + $0x40] sm:$0xff]  ;;  %v290_v40 = vld [vmem:[%s2119_s13 + $0x48] sm:$0xff]  ;;  %v344_v31 = vlaneseq }
  0x1e   : > { %975 = vmatprep.subr.bf16.mxu1 %v1883_v16  ;;  %v332_v43 = vpack.c.bf16 %v308_v37, %v307_v36  ;;  %v323_v45 = vpack.c.bf16 %v290_v40, %v289_v39  ;;  %v309_v47 = vld [vmem:[%s2119_s13 + $0xe0] sm:$0xff]  ;;  %v310_v48 = vld [vmem:[%s2119_s13 + $0xe8] sm:$0xff]  ;;  %v291_v49 = vld [vmem:[%s2119_s13 + $0x50] sm:$0xff] }
  0x1f   : > { %v292_v50 = vld [vmem:[%s2119_s13 + $0x58] sm:$0xff]  ;;  %v333_v53 = vpack.c.bf16 %v310_v48, %v309_v47  ;;  %v311_v57 = vld [vmem:[%s2119_s13 + $0xf0] sm:$0xff]  ;;  %v293_v59 = vld [vmem:[%s2119_s13 + $0x60] sm:$0xff] }
  0x20   : > { %v324_v54 = vpack.c.bf16 %v292_v50, %v291_v49  ;;  %v312_v58 = vld [vmem:[%s2119_s13 + $0xf8] sm:$0xff]  ;;  %v294_v60 = vld [vmem:[%s2119_s13 + $0x68] sm:$0xff]  ;;  %v313_v4 = vld [vmem:[%s2119_s13 + $0x100] sm:$0xff] }
  0x21   : > { %976 = vmatpush1.bf16.msra.mxu1 %v1881_v19  ;;  %v334_v63 = vpack.c.bf16 %v312_v58, %v311_v57  ;;  %v325_v0 = vpack.c.bf16 %v294_v60, %v293_v59  ;;  %v314_v5 = vld [vmem:[%s2119_s13 + $0x108] sm:$0xff]  ;;  %v295_v6 = vld [vmem:[%s2119_s13 + $0x70] sm:$0xff]  ;;  %v296_v7 = vld [vmem:[%s2119_s13 + $0x78] sm:$0xff] }
  0x22   : > { %977 = vmatprep.subr.bf16.mxu1 %v1886_v22  ;;  %v1911_v8 = vld [vmem:[%s2713_s3 + $0xb0] ss:$8 sps:$4 sm:$0xff]   ;;  %v1916_v9 = vld [vmem:[%s2713_s3 + $0xc4] ss:$8 sps:$4 sm:$0xff]   ;;  %v335_v10 = vpack.c.bf16 %v314_v5, %v313_v4  ;;  %v326_v11 = vpack.c.bf16 %v296_v7, %v295_v6  ;;  %v1919_v13 = vld [vmem:[%s2713_s3 + $0xd4] ss:$8 sps:$4 sm:$0xff]  }
  0x23   : > { %1754 = vmatmul.mubr.msk.bf16.gmra.mrb[4].mxu0 %vm374_vm0, %v320_v12  ;;  %v1914_v12 = vld [vmem:[%s2713_s3 + $0xc0] ss:$8 sps:$4 sm:$0xff]   ;;  %v315_v14 = vld [vmem:[%s2119_s13 + $0x110] sm:$0xff]  ;;  %v316_v15 = vld [vmem:[%s2119_s13 + $0x118] sm:$0xff] }
  0x24   : > { %484 = vmatprep.mubr.bf16.mxu0 %v2006_v2  ;;  %1764 = vmatmul.mubr.msk.bf16.gmra.mrb[4].mxu1 %vm374_vm0, %v330_v23  ;;  %v297_v16 = vld [vmem:[%s2119_s13 + $0x80] sm:$0xff]  ;;  %v298_v17 = vld [vmem:[%s2119_s13 + $0x88] sm:$0xff]  ;;  %v1917_v18 = vld [vmem:[%s2713_s3 + $0xd0] ss:$8 sps:$4 sm:$0xff]   ;;  %v336_v19 = vpack.c.bf16 %v316_v15, %v315_v14 }
  0x25   : > { %584 = vmatprep.mubr.bf16.mxu1 %v2006_v2  ;;  %978 = vmatpush1.bf16.msra.mxu1 %v1884_v25  ;;  %v327_v20 = vpack.c.bf16 %v298_v17, %v297_v16  ;;  %v317_v21 = vld [vmem:[%s2119_s13 + $0x120] sm:$0xff]  ;;  %v318_v22 = vld [vmem:[%s2119_s13 + $0x128] sm:$0xff]  ;;  %v299_v23 = vld [vmem:[%s2119_s13 + $0x90] sm:$0xff] }
  0x26   : > { %979 = vmatprep.subr.bf16.mxu1 %v1889_v26  ;;  %v337_v25 = vpack.c.bf16 %v318_v22, %v317_v21  ;;  %v1922_v27 = vld [vmem:[%s2713_s3 + $0xe4] ss:$8 sps:$4 sm:$0xff]   ;;  %v1925_v29 = vld [vmem:[%s2713_s3 + $0xf4] ss:$8 sps:$4 sm:$0xff]   ;;  %v1923_v30 = vld [vmem:[%s2713_s3 + $0xf0] ss:$8 sps:$4 sm:$0xff]  }
  0x29   : > { %980 = vmatpush1.bf16.msra.mxu1 %v1887_v28  ;;  %v1920_v28 = vld [vmem:[%s2713_s3 + $0xe0] ss:$8 sps:$4 sm:$0xff]  }
  0x2a   : > { %981 = vmatprep.subr.bf16.mxu1 %v1892_v32  ;;  %v2289_v32 = vshrl.u32 %v344_v31, 7 }
  0x2b   : > { %1755 = vmatmul.mubr.msk.bf16.gmra.mrb[8].mxu0 %vm374_vm0, %v321_v24  ;;  %v300_v24 = vld [vmem:[%s2119_s13 + $0x98] sm:$0xff]  ;;  %s2581_s13 = scalar_lea.vmem [#allocation2], %s1829_s19 }
  0x2c   : > { %494 = vmatprep.mubr.bf16.mxu0 %v2006_v2  ;;  %1765 = vmatmul.mubr.msk.bf16.gmra.mrb[8].mxu1 %vm374_vm0, %v331_v33  ;;  %v328_v26 = vpack.c.bf16 %v300_v24, %v299_v23  ;;  %v346_v33 = vsub.s32 0, %v2289_v32  ;;  %s1682_s23 = sshll.u32 %s2581_s13, 4  ;;  %s2662_s23 = int_to_ptr.vmem [resolvable:$true] %s1682_s23 }
  0x2d   : > { %594 = vmatprep.mubr.bf16.mxu1 %v2006_v2  ;;  %982 = vmatpush1.bf16.msra.mxu1 %v1890_v35  ;;  %v350_v35 = vsub.s32 1, %v2289_v32  ;;  %s1942_s14 = scalar_lea.vmem %s2662_s23, 4864  ;;  %p1949_p0 = scmp.lt.s32.totalorder %s2662_s23, %s1947_s16 }
  0x2e   : > { %983 = vmatprep.subr.bf16.mxu1 %v1895_v38  ;;  %p1943_p11 = scmp.ne.s32.totalorder %s2662_s23, %s1942_s14  ;;  %p1950_p1 = scmp.lt.s32.totalorder %s1948_s17, %s1942_s14 }
  0x30   : > { %p1944_p12 = pnand %p1943_p11, %p2088_p5  ;;  %p1951_p2 = por %p1950_p1, %p1949_p0 }
  0x31   : > { %984 = vmatpush1.bf16.msra.mxu1 %v1893_v41 }
  0x32   : > { %985 = vmatprep.subr.bf16.mxu1 %v1898_v42  ;;  %p1945_p13 = pneg %p1944_p12 }
  0x33   : > { %1756 = vmatmul.mubr.msk.bf16.gmra.mrb[12].mxu0 %vm374_vm0, %v322_v34  ;;  %v342_v34 = vld [vmem:[%s2712_s2] sm:$0x3] }
  0x34   : > { %504 = vmatprep.mubr.bf16.mxu0 %v2006_v2  ;;  %1766 = vmatmul.mubr.msk.bf16.gmra.mrb[12].mxu1 %vm374_vm0, %v332_v43  ;;  %v2298_v36 = vrot.slane %v342_v34, %v346_v33  ;;  %v2302_v37 = vrot.slane %v342_v34, %v350_v35  ;;  %p1952_p3 = pnand %p1951_p2, %p1945_p13 }
  0x35   : > { %604 = vmatprep.mubr.bf16.mxu1 %v2006_v2  ;;  %986 = vmatpush1.bf16.msra.mxu1 %v1896_v44 }
  0x36   : > { %987 = vmatprep.subr.bf16.mxu1 %v1901_v46 }
  0x39   : > { %988 = vmatpush1.bf16.msra.mxu1 %v1899_v51 }
  0x3a   : > { %989 = vmatprep.subr.bf16.mxu1 %v1904_v52 }
  0x3b   : > { %1757 = vmatmul.mubr.msk.bf16.gmra.mrb[16].mxu0 %vm374_vm0, %v323_v45 }
  0x3c   : > { %514 = vmatprep.mubr.bf16.mxu0 %v2006_v2  ;;  %1767 = vmatmul.mubr.msk.bf16.gmra.mrb[16].mxu1 %vm374_vm0, %v333_v53 }
  0x3d   : > { %614 = vmatprep.mubr.bf16.mxu1 %v2006_v2  ;;  %990 = vmatpush1.bf16.msra.mxu1 %v1902_v55 }
  0x3e   : > { %991 = vmatprep.subr.bf16.mxu1 %v1907_v56 }
  0x41   : > { %992 = vmatpush1.bf16.msra.mxu1 %v1905_v61 }
  0x42   : > { %993 = vmatprep.subr.bf16.mxu1 %v1910_v62 }
  0x43   : > { %1758 = vmatmul.mubr.msk.bf16.gmra.mrb[20].mxu0 %vm374_vm0, %v324_v54 }
  0x44   : > { %524 = vmatprep.mubr.bf16.mxu0 %v2006_v2  ;;  %1768 = vmatmul.mubr.msk.bf16.gmra.mrb[20].mxu1 %vm374_vm0, %v334_v63 }
  0x45   : > { %624 = vmatprep.mubr.bf16.mxu1 %v2006_v2  ;;  %994 = vmatpush1.bf16.msra.mxu1 %v1908_v1 }
  0x46   : > { %995 = vmatprep.subr.bf16.mxu1 %v1913_v3 }
  0x49   : > { %996 = vmatpush1.bf16.msra.mxu1 %v1911_v8 }
  0x4a   : > { %997 = vmatprep.subr.bf16.mxu1 %v1916_v9 }
  0x4b   : > { %1759 = vmatmul.mubr.msk.bf16.gmra.mrb[24].mxu0 %vm374_vm0, %v325_v0 }
  0x4c   : > { %534 = vmatprep.mubr.bf16.mxu0 %v2006_v2  ;;  %1769 = vmatmul.mubr.msk.bf16.gmra.mrb[24].mxu1 %vm374_vm0, %v335_v10 }
  0x4d   : > { %634 = vmatprep.mubr.bf16.mxu1 %v2006_v2  ;;  %998 = vmatpush1.bf16.msra.mxu1 %v1914_v12 }
  0x4e   : > { %999 = vmatprep.subr.bf16.mxu1 %v1919_v13 }
  0x51   : > { %1000 = vmatpush1.bf16.msra.mxu1 %v1917_v18 }
  0x52   : > { %1001 = vmatprep.subr.bf16.mxu1 %v1922_v27 }
  0x53   : > { %1760 = vmatmul.mubr.msk.bf16.gmra.mrb[28].mxu0 %vm374_vm0, %v326_v11 }
  0x54   : > { %544 = vmatprep.mubr.bf16.mxu0 %v2006_v2  ;;  %1770 = vmatmul.mubr.msk.bf16.gmra.mrb[28].mxu1 %vm374_vm0, %v336_v19 }
  0x55   : > { %644 = vmatprep.mubr.bf16.mxu1 %v2006_v2  ;;  %1002 = vmatpush1.bf16.msra.mxu1 %v1920_v28 }
  0x56   : > { %1003 = vmatprep.subr.bf16.mxu1 %v1925_v29 }
  0x59   : > { %1004 = vmatpush1.bf16.msra.mxu1 %v1923_v30 }
  0x5b   : > { %1761 = vmatmul.mubr.msk.bf16.gmra.mrb[32].mxu0 %vm374_vm0, %v327_v20 }
  0x5c   : > { %554 = vmatprep.mubr.bf16.mxu0 %v2006_v2  ;;  %1771 = vmatmul.mubr.msk.bf16.gmra.mrb[32].mxu1 %vm374_vm0, %v337_v25 }
  0x63   : > { %1762 = vmatmul.mubr.msk.bf16.gmra.mrb[36].mxu0 %vm374_vm0, %v328_v26 }
  0xee   : > { %v466_v38 = vpop.f32.mrb[0].mxu0 }
  0xef   : > { %v467_v39 = vadd.f32 %v466_v38, %v2298_v36  ;;  %v468_v40 = vpop.f32.mrb[1].mxu0  ;;  %v566_v51 = vpop.f32.mrb[0].mxu1 }
  0xf0   : > { %v469_v41 = vadd.f32 %v468_v40, %v2302_v37  ;;  %v470_v42 = vpop.f32.mrb[2].mxu0  ;;  %v567_v54 = vadd.f32 %v566_v51, %v2298_v36  ;;  %v568_v55 = vpop.f32.mrb[1].mxu1 }
  0xf1   : > { %v471_v43 = vadd.f32 %v470_v42, %v2298_v36  ;;  %v472_v44 = vpop.f32.mrb[3].mxu0  ;;  %v655_v46 = vmax.f32 %v467_v39, 0.0  ;;  %v569_v58 = vadd.f32 %v568_v55, %v2302_v37  ;;  %v570_v59 = vpop.f32.mrb[2].mxu1 }
  0xf2   : > { %v473_v45 = vadd.f32 %v472_v44, %v2302_v37  ;;  %v656_v48 = vmax.f32 %v469_v41, 0.0  ;;  %v695_v62 = vmax.f32 %v567_v54, 0.0  ;;  %v571_v63 = vadd.f32 %v570_v59, %v2298_v36  ;;  %v572_v0 = vpop.f32.mrb[3].mxu1  ;;  %v1926_v41 = vld [vmem:[%s2715_s5] sm:$0xff]  }
  0xf3   : > { %v657_v47 = vmax.f32 %v471_v43, 0.0  ;;  %v696_v4 = vmax.f32 %v569_v58, 0.0  ;;  %v573_v5 = vadd.f32 %v572_v0, %v2302_v37  ;;  %1446 = vmatpush1.bf16.msra.mxu0 %v1926_v41 }
  0xf4   : > { %v658_v49 = vmax.f32 %v473_v45, 0.0  ;;  %v697_v7 = vmax.f32 %v571_v63, 0.0  ;;  %1447 = vmatprep.subr.bf16.mxu0 %v2006_v2 }
  0xf5   : > { %v731_v50 = vpack.c.bf16 %v657_v47, %v655_v46  ;;  %v698_v10 = vmax.f32 %v573_v5, 0.0  ;;  %v1927_v5 = vld [vmem:[%s2715_s5 + $0x8] sm:$0xff]  }
  0xf6   : > { %v732_v52 = vpack.c.bf16 %v658_v49, %v656_v48  ;;  %v476_v53 = vpop.f32.mrb[4].mxu0  ;;  %v2316_v13 = vpack.c.bf16 %v697_v7, %v695_v62 }
  0xf7   : > { %v477_v56 = vadd.f32 %v476_v53, %v2298_v36  ;;  %v478_v57 = vpop.f32.mrb[5].mxu0  ;;  %v2318_v15 = vpack.c.bf16 %v698_v10, %v696_v4  ;;  %v576_v16 = vpop.f32.mrb[4].mxu1  ;;  %1448 = vmatpush1.bf16.msra.mxu0 %v1927_v5 }
  0xf8   : > { %v479_v60 = vadd.f32 %v478_v57, %v2302_v37  ;;  %v480_v61 = vpop.f32.mrb[6].mxu0  ;;  %1005 = vmatprep.mubr.bf16.mxu1 %v732_v52  ;;  %v577_v19 = vadd.f32 %v576_v16, %v2298_v36  ;;  %v578_v20 = vpop.f32.mrb[5].mxu1  ;;  %1449 = vmatprep.subr.bf16.mxu0 %v2006_v2 }
  0xf9   : > { %v481_v1 = vadd.f32 %v480_v61, %v2298_v36  ;;  %v482_v3 = vpop.f32.mrb[7].mxu0  ;;  %1006 = vmatmul.mubr.bf16.vlgmr.msra.gmra.mrb[36].mxu1 %v731_v50  ;;  %v659_v8 = vmax.f32 %v477_v56, 0.0  ;;  %v579_v23 = vadd.f32 %v578_v20, %v2302_v37  ;;  %v580_v24 = vpop.f32.mrb[6].mxu1 }
  0xfa   : > { %v483_v6 = vadd.f32 %v482_v3, %v2302_v37  ;;  %v660_v11 = vmax.f32 %v479_v60, 0.0  ;;  %v699_v27 = vmax.f32 %v577_v19, 0.0  ;;  %v581_v28 = vadd.f32 %v580_v24, %v2298_v36  ;;  %v582_v29 = vpop.f32.mrb[7].mxu1 }
  0xfb   : > { %v661_v9 = vmax.f32 %v481_v1, 0.0  ;;  %v700_v34 = vmax.f32 %v579_v23, 0.0  ;;  %v583_v38 = vadd.f32 %v582_v29, %v2302_v37 }
  0xfc   : > { %v662_v12 = vmax.f32 %v483_v6, 0.0  ;;  %v701_v40 = vmax.f32 %v581_v28, 0.0  ;;  %v1929_v28 = vld [vmem:[%s2715_s5 + $0x18] sm:$0xff]  }
  0xfd   : > { %v733_v14 = vpack.c.bf16 %v661_v9, %v659_v8  ;;  %v702_v44 = vmax.f32 %v583_v38, 0.0 }
  0xfe   : > { %v734_v17 = vpack.c.bf16 %v662_v12, %v660_v11  ;;  %v486_v18 = vpop.f32.mrb[8].mxu0  ;;  %v2331_v47 = vpack.c.bf16 %v701_v40, %v699_v27  ;;  %v1928_v11 = vld [vmem:[%s2715_s5 + $0x10] sm:$0xff]  }
  0xff   : > { %v487_v21 = vadd.f32 %v486_v18, %v2298_v36  ;;  %v488_v22 = vpop.f32.mrb[9].mxu0  ;;  %v2333_v49 = vpack.c.bf16 %v702_v44, %v700_v34  ;;  %v586_v50 = vpop.f32.mrb[8].mxu1  ;;  %1450 = vmatpush1.bf16.msra.mxu0 %v1928_v11 }
 0x100   : > { %v489_v25 = vadd.f32 %v488_v22, %v2302_v37  ;;  %v490_v26 = vpop.f32.mrb[10].mxu0  ;;  %1015 = vmatprep.mubr.bf16.mxu1 %v734_v17  ;;  %v587_v53 = vadd.f32 %v586_v50, %v2298_v36  ;;  %v588_v54 = vpop.f32.mrb[9].mxu1  ;;  %1451 = vmatprep.subr.bf16.mxu0 %v2006_v2  ;;  %v1930_v50 = vld [vmem:[%s2715_s5 + $0x20] sm:$0xff]  }
 0x101   : > { %v491_v30 = vadd.f32 %v490_v26, %v2298_v36  ;;  %v492_v31 = vpop.f32.mrb[11].mxu0  ;;  %1016 = vmatmul.mubr.bf16.gmra.mrb[40].mxu1 %v733_v14  ;;  %v663_v42 = vmax.f32 %v487_v21, 0.0  ;;  %v589_v57 = vadd.f32 %v588_v54, %v2302_v37  ;;  %v590_v58 = vpop.f32.mrb[10].mxu1 }
 0x102   : > { %v493_v39 = vadd.f32 %v492_v31, %v2302_v37  ;;  %v664_v45 = vmax.f32 %v489_v25, 0.0  ;;  %v703_v61 = vmax.f32 %v587_v53, 0.0  ;;  %v591_v62 = vadd.f32 %v590_v58, %v2298_v36  ;;  %v592_v63 = vpop.f32.mrb[11].mxu1 }
 0x103   : > { %v665_v43 = vmax.f32 %v491_v30, 0.0  ;;  %v704_v3 = vmax.f32 %v589_v57, 0.0  ;;  %v593_v4 = vadd.f32 %v592_v63, %v2302_v37  ;;  %1452 = vmatpush1.bf16.msra.mxu0 %v1929_v28 }
 0x104   : > { %v666_v46 = vmax.f32 %v493_v39, 0.0  ;;  %v705_v7 = vmax.f32 %v591_v62, 0.0  ;;  %1453 = vmatprep.subr.bf16.mxu0 %v2006_v2 }
 0x105   : > { %v735_v48 = vpack.c.bf16 %v665_v43, %v663_v42  ;;  %v706_v10 = vmax.f32 %v593_v4, 0.0 }
 0x106   : > { %v736_v51 = vpack.c.bf16 %v666_v46, %v664_v45  ;;  %v496_v52 = vpop.f32.mrb[12].mxu0  ;;  %v2350_v16 = vpack.c.bf16 %v705_v7, %v703_v61 }
 0x107   : > { %v497_v55 = vadd.f32 %v496_v52, %v2298_v36  ;;  %v498_v56 = vpop.f32.mrb[13].mxu0  ;;  %v2353_v18 = vpack.c.bf16 %v706_v10, %v704_v3  ;;  %v596_v19 = vpop.f32.mrb[12].mxu1  ;;  %1454 = vmatpush1.bf16.msra.mxu0 %v1930_v50 }
 0x108   : > { %v499_v59 = vadd.f32 %v498_v56, %v2302_v37  ;;  %v500_v60 = vpop.f32.mrb[14].mxu0  ;;  %1025 = vmatprep.mubr.bf16.mxu1 %v736_v51  ;;  %v597_v22 = vadd.f32 %v596_v19, %v2298_v36  ;;  %v598_v23 = vpop.f32.mrb[13].mxu1  ;;  %1455 = vmatprep.subr.bf16.mxu0 %v2006_v2 }
 0x109   : > { %v501_v0 = vadd.f32 %v500_v60, %v2298_v36  ;;  %v502_v1 = vpop.f32.mrb[15].mxu0  ;;  %1026 = vmatmul.mubr.bf16.gmra.mrb[44].mxu1 %v735_v48  ;;  %v667_v8 = vmax.f32 %v497_v55, 0.0  ;;  %v599_v26 = vadd.f32 %v598_v23, %v2302_v37  ;;  %v600_v27 = vpop.f32.mrb[14].mxu1 }
 0x10a   : > { %v503_v6 = vadd.f32 %v502_v1, %v2302_v37  ;;  %v668_v12 = vmax.f32 %v499_v59, 0.0  ;;  %v707_v31 = vmax.f32 %v597_v22, 0.0  ;;  %v601_v34 = vadd.f32 %v600_v27, %v2298_v36  ;;  %v602_v38 = vpop.f32.mrb[15].mxu1  ;;  %v1931_v1 = vld [vmem:[%s2715_s5 + $0x28] sm:$0xff]  }
 0x10b   : > { %v669_v9 = vmax.f32 %v501_v0, 0.0  ;;  %v708_v41 = vmax.f32 %v599_v26, 0.0  ;;  %v603_v42 = vadd.f32 %v602_v38, %v2302_v37  ;;  %1456 = vmatpush1.bf16.msra.mxu0 %v1931_v1 }
 0x10c   : > { %v670_v14 = vmax.f32 %v503_v6, 0.0  ;;  %v709_v44 = vmax.f32 %v601_v34, 0.0  ;;  %1457 = vmatprep.subr.bf16.mxu0 %v2006_v2 }
 0x10d   : > { %v737_v17 = vpack.c.bf16 %v669_v9, %v667_v8  ;;  %v710_v48 = vmax.f32 %v603_v42, 0.0 }
 0x10e   : > { %v738_v20 = vpack.c.bf16 %v670_v14, %v668_v12  ;;  %v506_v21 = vpop.f32.mrb[16].mxu0  ;;  %v2370_v53 = vpack.c.bf16 %v709_v44, %v707_v31 }
 0x10f   : > { %v507_v24 = vadd.f32 %v506_v21, %v2298_v36  ;;  %v508_v25 = vpop.f32.mrb[17].mxu0  ;;  %v2373_v55 = vpack.c.bf16 %v710_v48, %v708_v41  ;;  %v606_v56 = vpop.f32.mrb[16].mxu1  ;;  %v1932_v21 = vld [vmem:[%s2715_s5 + $0x30] sm:$0xff]   ;;  %v1933_v41 = vld [vmem:[%s2715_s5 + $0x38] sm:$0xff]  }
 0x110   : > { %v509_v29 = vadd.f32 %v508_v25, %v2302_v37  ;;  %v510_v30 = vpop.f32.mrb[18].mxu0  ;;  %1035 = vmatprep.mubr.bf16.mxu1 %v738_v20  ;;  %v607_v59 = vadd.f32 %v606_v56, %v2298_v36  ;;  %v608_v60 = vpop.f32.mrb[17].mxu1  ;;  %1458 = vmatpush1.bf16.msra.mxu0 %v1932_v21 }
 0x111   : > { %v511_v39 = vadd.f32 %v510_v30, %v2298_v36  ;;  %v512_v40 = vpop.f32.mrb[19].mxu0  ;;  %1036 = vmatmul.mubr.bf16.gmra.mrb[48].mxu1 %v737_v17  ;;  %v671_v45 = vmax.f32 %v507_v24, 0.0  ;;  %v609_v63 = vadd.f32 %v608_v60, %v2302_v37  ;;  %v610_v0 = vpop.f32.mrb[18].mxu1  ;;  %1459 = vmatprep.subr.bf16.mxu0 %v2006_v2  ;;  %v1934_v60 = vld [vmem:[%s2715_s5 + $0x40] sm:$0xff]  }
 0x112   : > { %v513_v43 = vadd.f32 %v512_v40, %v2302_v37  ;;  %v672_v51 = vmax.f32 %v509_v29, 0.0  ;;  %v711_v5 = vmax.f32 %v607_v59, 0.0  ;;  %v611_v6 = vadd.f32 %v610_v0, %v2298_v36  ;;  %v612_v7 = vpop.f32.mrb[19].mxu1 }
 0x113   : > { %v673_v46 = vmax.f32 %v511_v39, 0.0  ;;  %v712_v10 = vmax.f32 %v609_v63, 0.0  ;;  %v613_v11 = vadd.f32 %v612_v7, %v2302_v37 }
 0x114   : > { %v674_v52 = vmax.f32 %v513_v43, 0.0  ;;  %v713_v14 = vmax.f32 %v611_v6, 0.0  ;;  %1460 = vmatpush1.bf16.msra.mxu0 %v1933_v41 }
 0x115   : > { %v739_v54 = vpack.c.bf16 %v673_v46, %v671_v45  ;;  %v714_v20 = vmax.f32 %v613_v11, 0.0  ;;  %1461 = vmatprep.subr.bf16.mxu0 %v2006_v2 }
 0x116   : > { %v740_v57 = vpack.c.bf16 %v674_v52, %v672_v51  ;;  %v516_v58 = vpop.f32.mrb[20].mxu0  ;;  %v2390_v24 = vpack.c.bf16 %v713_v14, %v711_v5 }
 0x117   : > { %v517_v61 = vadd.f32 %v516_v58, %v2298_v36  ;;  %v518_v62 = vpop.f32.mrb[21].mxu0  ;;  %v2393_v26 = vpack.c.bf16 %v714_v20, %v712_v10  ;;  %v616_v27 = vpop.f32.mrb[20].mxu1 }
 0x118   : > { %v519_v3 = vadd.f32 %v518_v62, %v2302_v37  ;;  %v520_v4 = vpop.f32.mrb[22].mxu0  ;;  %1045 = vmatprep.mubr.bf16.mxu1 %v740_v57  ;;  %v617_v30 = vadd.f32 %v616_v27, %v2298_v36  ;;  %v618_v31 = vpop.f32.mrb[21].mxu1  ;;  %1462 = vmatpush1.bf16.msra.mxu0 %v1934_v60 }
 0x119   : > { %v521_v8 = vadd.f32 %v520_v4, %v2298_v36  ;;  %v522_v9 = vpop.f32.mrb[23].mxu0  ;;  %1046 = vmatmul.mubr.bf16.gmra.mrb[52].mxu1 %v739_v54  ;;  %v675_v17 = vmax.f32 %v517_v61, 0.0  ;;  %v619_v39 = vadd.f32 %v618_v31, %v2302_v37  ;;  %v620_v40 = vpop.f32.mrb[22].mxu1  ;;  %1463 = vmatprep.subr.bf16.mxu0 %v2006_v2 }
 0x11a   : > { %v523_v12 = vadd.f32 %v522_v9, %v2302_v37  ;;  %v676_v22 = vmax.f32 %v519_v3, 0.0  ;;  %v715_v44 = vmax.f32 %v617_v30, 0.0  ;;  %v621_v45 = vadd.f32 %v620_v40, %v2298_v36  ;;  %v622_v46 = vpop.f32.mrb[23].mxu1 }
 0x11b   : > { %v677_v19 = vmax.f32 %v521_v8, 0.0  ;;  %v716_v51 = vmax.f32 %v619_v39, 0.0  ;;  %v623_v52 = vadd.f32 %v622_v46, %v2302_v37 }
 0x11c   : > { %v678_v23 = vmax.f32 %v523_v12, 0.0  ;;  %v717_v56 = vmax.f32 %v621_v45, 0.0  ;;  %v1935_v12 = vld [vmem:[%s2715_s5 + $0x48] sm:$0xff]  }
 0x11d   : > { %v741_v25 = vpack.c.bf16 %v677_v19, %v675_v17  ;;  %v718_v59 = vmax.f32 %v623_v52, 0.0  ;;  %1464 = vmatpush1.bf16.msra.mxu0 %v1935_v12 }
 0x11e   : > { %v742_v28 = vpack.c.bf16 %v678_v23, %v676_v22  ;;  %v526_v29 = vpop.f32.mrb[24].mxu0  ;;  %v2410_v63 = vpack.c.bf16 %v717_v56, %v715_v44  ;;  %1465 = vmatprep.subr.bf16.mxu0 %v2006_v2 }
 0x11f   : > { %v527_v34 = vadd.f32 %v526_v29, %v2298_v36  ;;  %v528_v38 = vpop.f32.mrb[25].mxu0  ;;  %v2413_v1 = vpack.c.bf16 %v718_v59, %v716_v51  ;;  %v626_v3 = vpop.f32.mrb[24].mxu1 }
 0x120   : > { %v529_v42 = vadd.f32 %v528_v38, %v2302_v37  ;;  %v530_v43 = vpop.f32.mrb[26].mxu0  ;;  %1055 = vmatprep.mubr.bf16.mxu1 %v742_v28  ;;  %v627_v6 = vadd.f32 %v626_v3, %v2298_v36  ;;  %v628_v7 = vpop.f32.mrb[25].mxu1  ;;  %v1936_v38 = vld [vmem:[%s2715_s5 + $0x50] sm:$0xff]  }
 0x121   : > { %v531_v48 = vadd.f32 %v530_v43, %v2298_v36  ;;  %v532_v50 = vpop.f32.mrb[27].mxu0  ;;  %1056 = vmatmul.mubr.bf16.gmra.mrb[56].mxu1 %v741_v25  ;;  %v679_v57 = vmax.f32 %v527_v34, 0.0  ;;  %v629_v10 = vadd.f32 %v628_v7, %v2302_v37  ;;  %v630_v11 = vpop.f32.mrb[26].mxu1  ;;  %1466 = vmatpush1.bf16.msra.mxu0 %v1936_v38 }
 0x122   : > { %v533_v54 = vadd.f32 %v532_v50, %v2302_v37  ;;  %v680_v61 = vmax.f32 %v529_v42, 0.0  ;;  %v719_v19 = vmax.f32 %v627_v6, 0.0  ;;  %v631_v20 = vadd.f32 %v630_v11, %v2298_v36  ;;  %v632_v21 = vpop.f32.mrb[27].mxu1  ;;  %1467 = vmatprep.subr.bf16.mxu0 %v2006_v2  ;;  %v1938_v11 = vld [vmem:[%s2715_s5 + $0x60] sm:$0xff]  }
 0x123   : > { %v681_v58 = vmax.f32 %v531_v48, 0.0  ;;  %v720_v25 = vmax.f32 %v629_v10, 0.0  ;;  %v633_v27 = vadd.f32 %v632_v21, %v2302_v37 }
 0x124   : > { %v682_v62 = vmax.f32 %v533_v54, 0.0  ;;  %v721_v29 = vmax.f32 %v631_v20, 0.0 }
 0x125   : > { %v743_v0 = vpack.c.bf16 %v681_v58, %v679_v57  ;;  %v722_v34 = vmax.f32 %v633_v27, 0.0  ;;  %v1937_v57 = vld [vmem:[%s2715_s5 + $0x58] sm:$0xff]  }
 0x126   : > { %v744_v4 = vpack.c.bf16 %v682_v62, %v680_v61  ;;  %v536_v5 = vpop.f32.mrb[28].mxu0  ;;  %v2430_v41 = vpack.c.bf16 %v721_v29, %v719_v19  ;;  %1468 = vmatpush1.bf16.msra.mxu0 %v1937_v57 }
 0x127   : > { %v537_v8 = vadd.f32 %v536_v5, %v2298_v36  ;;  %v538_v9 = vpop.f32.mrb[29].mxu0  ;;  %v2433_v43 = vpack.c.bf16 %v722_v34, %v720_v25  ;;  %v636_v44 = vpop.f32.mrb[28].mxu1  ;;  %1469 = vmatprep.subr.bf16.mxu0 %v2006_v2  ;;  %v1939_v34 = vld [vmem:[%s2715_s5 + $0x68] sm:$0xff]  }
 0x128   : > { %v539_v14 = vadd.f32 %v538_v9, %v2302_v37  ;;  %v540_v17 = vpop.f32.mrb[30].mxu0  ;;  %1065 = vmatprep.mubr.bf16.mxu1 %v744_v4  ;;  %v637_v48 = vadd.f32 %v636_v44, %v2298_v36  ;;  %v638_v50 = vpop.f32.mrb[29].mxu1 }
 0x129   : > { %v541_v22 = vadd.f32 %v540_v17, %v2298_v36  ;;  %v542_v23 = vpop.f32.mrb[31].mxu0  ;;  %1066 = vmatmul.mubr.bf16.gmra.mrb[60].mxu1 %v743_v0  ;;  %v683_v30 = vmax.f32 %v537_v8, 0.0  ;;  %v639_v54 = vadd.f32 %v638_v50, %v2302_v37  ;;  %v640_v56 = vpop.f32.mrb[30].mxu1 }
 0x12a   : > { %v543_v28 = vadd.f32 %v542_v23, %v2302_v37  ;;  %v684_v39 = vmax.f32 %v539_v14, 0.0  ;;  %v723_v60 = vmax.f32 %v637_v48, 0.0  ;;  %v641_v61 = vadd.f32 %v640_v56, %v2298_v36  ;;  %v642_v62 = vpop.f32.mrb[31].mxu1  ;;  %1470 = vmatpush1.bf16.msra.mxu0 %v1938_v11 }
 0x12b   : > { %v685_v31 = vmax.f32 %v541_v22, 0.0  ;;  %v724_v4 = vmax.f32 %v639_v54, 0.0  ;;  %v643_v5 = vadd.f32 %v642_v62, %v2302_v37  ;;  %1471 = vmatprep.subr.bf16.mxu0 %v2006_v2 }
 0x12c   : > { %v686_v40 = vmax.f32 %v543_v28, 0.0  ;;  %v725_v7 = vmax.f32 %v641_v61, 0.0 }
 0x12d   : > { %v745_v42 = vpack.c.bf16 %v685_v31, %v683_v30  ;;  %v726_v10 = vmax.f32 %v643_v5, 0.0 }
 0x12e   : > { %v746_v45 = vpack.c.bf16 %v686_v40, %v684_v39  ;;  %v546_v46 = vpop.f32.mrb[32].mxu0  ;;  %v765_v17 = vpack.c.bf16 %v725_v7, %v723_v60  ;;  %1472 = vmatpush1.bf16.msra.mxu0 %v1939_v34 }
 0x12f   : > { %v547_v51 = vadd.f32 %v546_v46, %v2298_v36  ;;  %v548_v52 = vpop.f32.mrb[33].mxu0  ;;  %v766_v20 = vpack.c.bf16 %v726_v10, %v724_v4  ;;  %v646_v21 = vpop.f32.mrb[32].mxu1  ;;  %1473 = vmatprep.subr.bf16.mxu0 %v2006_v2 }
 0x130   : > { %v549_v58 = vadd.f32 %v548_v52, %v2302_v37  ;;  %v550_v59 = vpop.f32.mrb[34].mxu0  ;;  %1075 = vmatprep.mubr.bf16.mxu1 %v746_v45  ;;  %v647_v25 = vadd.f32 %v646_v21, %v2298_v36  ;;  %v648_v27 = vpop.f32.mrb[33].mxu1 }
 0x131   : > { %v551_v0 = vadd.f32 %v550_v59, %v2298_v36  ;;  %v552_v3 = vpop.f32.mrb[35].mxu0  ;;  %1076 = vmatmul.mubr.bf16.gmra.mrb[64].mxu1 %v745_v42  ;;  %v687_v8 = vmax.f32 %v547_v51, 0.0  ;;  %v649_v30 = vadd.f32 %v648_v27, %v2302_v37  ;;  %v650_v31 = vpop.f32.mrb[34].mxu1 }
 0x132   : > { %v553_v6 = vadd.f32 %v552_v3, %v2302_v37  ;;  %v688_v12 = vmax.f32 %v549_v58, 0.0  ;;  %v727_v40 = vmax.f32 %v647_v25, 0.0  ;;  %v651_v42 = vadd.f32 %v650_v31, %v2298_v36  ;;  %v652_v44 = vpop.f32.mrb[35].mxu1 }
 0x133   : > { %v689_v9 = vmax.f32 %v551_v0, 0.0  ;;  %v728_v48 = vmax.f32 %v649_v30, 0.0  ;;  %v653_v50 = vadd.f32 %v652_v44, %v2302_v37  ;;  %v1941_v0 = vld [vmem:[%s2715_s5 + $0x78] sm:$0xff]  }
 0x134   : > { %v690_v14 = vmax.f32 %v553_v6, 0.0  ;;  %v729_v52 = vmax.f32 %v651_v42, 0.0 }
 0x135   : > { %v747_v19 = vpack.c.bf16 %v689_v9, %v687_v8  ;;  %v730_v57 = vmax.f32 %v653_v50, 0.0 }
 0x136   : > { %v748_v22 = vpack.c.bf16 %v690_v14, %v688_v12  ;;  %v556_v23 = vpop.f32.mrb[36].mxu0  ;;  %v767_v60 = vpack.c.bf16 %v729_v52, %v727_v40 }
 0x137   : > { %v557_v28 = vadd.f32 %v556_v23, %v2298_v36  ;;  %v558_v29 = vpop.f32.mrb[37].mxu0  ;;  %v768_v62 = vpack.c.bf16 %v730_v57, %v728_v48 }
 0x138   : > { %v559_v38 = vadd.f32 %v558_v29, %v2302_v37  ;;  %v560_v39 = vpop.f32.mrb[38].mxu0  ;;  %1085 = vmatprep.mubr.bf16.mxu1 %v748_v22 }
 0x139   : > { %v561_v45 = vadd.f32 %v560_v39, %v2298_v36  ;;  %v562_v46 = vpop.f32.mrb[39].mxu0  ;;  %1086 = vmatmul.mubr.bf16.gmra.mrb[68].mxu1 %v747_v19  ;;  %v691_v54 = vmax.f32 %v557_v28, 0.0 }
 0x13a   : > { %v563_v51 = vadd.f32 %v562_v46, %v2302_v37  ;;  %v692_v58 = vmax.f32 %v559_v38, 0.0  ;;  %v1940_v37 = vld [vmem:[%s2715_s5 + $0x70] sm:$0xff]  }
 0x13b   : > { %v693_v56 = vmax.f32 %v561_v45, 0.0  ;;  %1474 = vmatpush1.bf16.msra.mxu0 %v1940_v37 }
 0x13c   : > { %v694_v59 = vmax.f32 %v563_v51, 0.0  ;;  %1475 = vmatprep.subr.bf16.mxu0 %v2006_v2  ;;  %v801_v2 = vld [vmem:[%s2714_s4] sm:$0x3] }
 0x13d   : > { %v749_v61 = vpack.c.bf16 %v693_v56, %v691_v54 }
 0x13e   : > { %v750_v36 = vpack.c.bf16 %v694_v59, %v692_v58 }
 0x13f   : > { %1476 = vmatpush1.bf16.msra.mxu0 %v1941_v0 }
 0x140   : > { %1095 = vmatprep.mubr.bf16.mxu1 %v750_v36 }
 0x141   : > { %1096 = vmatmul.mubr.bf16.gmra.mrb[72].mxu1 %v749_v61 }
 0x142   : > { %1105 = vmatprep.mubr.bf16.mxu1 %v2318_v15  ;;  %v2494_v15 = vrot.slane %v801_v2, %v350_v35 }
 0x149   : > { %1106 = vmatmul.mubr.bf16.gmra.mrb[76].mxu1 %v2316_v13  ;;  %v2490_v13 = vrot.slane %v801_v2, %v346_v33 }
 0x14a   : > { %1115 = vmatprep.mubr.bf16.mxu1 %v2333_v49 }
 0x151   : > { %1116 = vmatmul.mubr.bf16.gmra.mrb[80].mxu1 %v2331_v47 }
 0x152   : > { %1125 = vmatprep.mubr.bf16.mxu1 %v2353_v18 }
 0x159   : > { %1126 = vmatmul.mubr.bf16.gmra.mrb[84].mxu1 %v2350_v16 }
 0x15a   : > { %1135 = vmatprep.mubr.bf16.mxu1 %v2373_v55 }
 0x161   : > { %1136 = vmatmul.mubr.bf16.gmra.mrb[88].mxu1 %v2370_v53 }
 0x162   : > { %1145 = vmatprep.mubr.bf16.mxu1 %v2393_v26 }
 0x169   : > { %1146 = vmatmul.mubr.bf16.gmra.mrb[92].mxu1 %v2390_v24 }
 0x16a   : > { %1155 = vmatprep.mubr.bf16.mxu1 %v2413_v1 }
 0x171   : > { %1156 = vmatmul.mubr.bf16.gmra.mrb[96].mxu1 %v2410_v63 }
 0x172   : > { %1165 = vmatprep.mubr.bf16.mxu1 %v2433_v43 }
 0x179   : > { %1166 = vmatmul.mubr.bf16.gmra.mrb[100].mxu1 %v2430_v41 }
 0x17a   : > { %1175 = vmatprep.mubr.bf16.mxu1 %v766_v20 }
 0x181   : > { %1176 = vmatmul.mubr.bf16.gmra.mrb[104].mxu1 %v765_v17 }
 0x182   : > { %1185 = vmatprep.mubr.bf16.mxu1 %v768_v62 }
 0x189   : > { %1186 = vmatmul.mubr.bf16.gmra.mrb[108].mxu1 %v767_v60 }
 0x1cc   : > { %v1007_v47 = vpop.f32.mrb[36].mxu1 }
 0x1cd   : > { %v1008_v49 = vadd.f32 %v1007_v47, %v2490_v13  ;;  %v1009_v16 = vpop.f32.mrb[37].mxu1 }
 0x1ce   : > { %v1010_v18 = vadd.f32 %v1009_v16, %v2494_v15  ;;  %v1011_v53 = vpop.f32.mrb[38].mxu1 }
 0x1cf   : > { %v1012_v55 = vadd.f32 %v1011_v53, %v2490_v13  ;;  %v1013_v24 = vpop.f32.mrb[39].mxu1  ;;  %v1196_v63 = vmax.f32 %v1008_v49, 0.0 }
 0x1d0   : > { %v1014_v26 = vadd.f32 %v1013_v24, %v2494_v15  ;;  %v1197_v33 = vmax.f32 %v1010_v18, 0.0 }
 0x1d1   : > { %v1198_v1 = vmax.f32 %v1012_v55, 0.0 }
 0x1d2   : > { %v1199_v41 = vmax.f32 %v1014_v26, 0.0 }
 0x1d3   : > { %v1272_v43 = vpack.c.bf16 %v1198_v1, %v1196_v63 }
 0x1d4   : > { %v1273_v32 = vpack.c.bf16 %v1199_v41, %v1197_v33  ;;  %v1017_v35 = vpop.f32.mrb[40].mxu1 }
 0x1d5   : > { %v1018_v3 = vadd.f32 %v1017_v35, %v2490_v13  ;;  %v1019_v4 = vpop.f32.mrb[41].mxu1 }
 0x1d6   : > { %v1020_v5 = vadd.f32 %v1019_v4, %v2494_v15  ;;  %v1021_v6 = vpop.f32.mrb[42].mxu1  ;;  %1477 = vmatprep.mubr.bf16.mxu0 %v1273_v32 }
 0x1d7   : > { %v1022_v7 = vadd.f32 %v1021_v6, %v2490_v13  ;;  %v1023_v8 = vpop.f32.mrb[43].mxu1  ;;  %1478 = vmatmul.mubr.bf16.vlgmr.msra.gmra.mrb[40].mxu0 %v1272_v43  ;;  %v1200_v10 = vmax.f32 %v1018_v3, 0.0 }
 0x1d8   : > { %v1024_v9 = vadd.f32 %v1023_v8, %v2494_v15  ;;  %v1201_v12 = vmax.f32 %v1020_v5, 0.0 }
 0x1d9   : > { %v1202_v11 = vmax.f32 %v1022_v7, 0.0 }
 0x1da   : > { %v1203_v14 = vmax.f32 %v1024_v9, 0.0 }
 0x1db   : > { %v1274_v17 = vpack.c.bf16 %v1202_v11, %v1200_v10 }
 0x1dc   : > { %v1275_v19 = vpack.c.bf16 %v1203_v14, %v1201_v12  ;;  %v1027_v20 = vpop.f32.mrb[44].mxu1 }
 0x1dd   : > { %v1028_v21 = vadd.f32 %v1027_v20, %v2490_v13  ;;  %v1029_v22 = vpop.f32.mrb[45].mxu1 }
 0x1de   : > { %v1030_v23 = vadd.f32 %v1029_v22, %v2494_v15  ;;  %v1031_v25 = vpop.f32.mrb[46].mxu1  ;;  %1485 = vmatprep.mubr.bf16.mxu0 %v1275_v19 }
 0x1df   : > { %v1032_v27 = vadd.f32 %v1031_v25, %v2490_v13  ;;  %v1033_v28 = vpop.f32.mrb[47].mxu1  ;;  %1486 = vmatmul.mubr.bf16.gmra.mrb[44].mxu0 %v1274_v17  ;;  %v1204_v30 = vmax.f32 %v1028_v21, 0.0 }
 0x1e0   : > { %v1034_v29 = vadd.f32 %v1033_v28, %v2494_v15  ;;  %v1205_v34 = vmax.f32 %v1030_v23, 0.0 }
 0x1e1   : > { %v1206_v31 = vmax.f32 %v1032_v27, 0.0 }
 0x1e2   : > { %v1207_v38 = vmax.f32 %v1034_v29, 0.0 }
 0x1e3   : > { %v1276_v39 = vpack.c.bf16 %v1206_v31, %v1204_v30 }
 0x1e4   : > { %v1277_v40 = vpack.c.bf16 %v1207_v38, %v1205_v34  ;;  %v1037_v42 = vpop.f32.mrb[48].mxu1 }
 0x1e5   : > { %v1038_v44 = vadd.f32 %v1037_v42, %v2490_v13  ;;  %v1039_v45 = vpop.f32.mrb[49].mxu1 }
 0x1e6   : > { %v1040_v46 = vadd.f32 %v1039_v45, %v2494_v15  ;;  %v1041_v48 = vpop.f32.mrb[50].mxu1  ;;  %1493 = vmatprep.mubr.bf16.mxu0 %v1277_v40 }
 0x1e7   : > { %v1042_v50 = vadd.f32 %v1041_v48, %v2490_v13  ;;  %v1043_v51 = vpop.f32.mrb[51].mxu1  ;;  %1494 = vmatmul.mubr.bf16.gmra.mrb[48].mxu0 %v1276_v39  ;;  %v1208_v54 = vmax.f32 %v1038_v44, 0.0 }
 0x1e8   : > { %v1044_v52 = vadd.f32 %v1043_v51, %v2494_v15  ;;  %v1209_v57 = vmax.f32 %v1040_v46, 0.0 }
 0x1e9   : > { %v1210_v56 = vmax.f32 %v1042_v50, 0.0 }
 0x1ea   : > { %v1211_v58 = vmax.f32 %v1044_v52, 0.0 }
 0x1eb   : > { %v1278_v59 = vpack.c.bf16 %v1210_v56, %v1208_v54 }
 0x1ec   : > { %v1279_v60 = vpack.c.bf16 %v1211_v58, %v1209_v57  ;;  %v1047_v61 = vpop.f32.mrb[52].mxu1 }
 0x1ed   : > { %v1048_v62 = vadd.f32 %v1047_v61, %v2490_v13  ;;  %v1049_v36 = vpop.f32.mrb[53].mxu1 }
 0x1ee   : > { %v1050_v37 = vadd.f32 %v1049_v36, %v2494_v15  ;;  %v1051_v0 = vpop.f32.mrb[54].mxu1  ;;  %1501 = vmatprep.mubr.bf16.mxu0 %v1279_v60 }
 0x1ef   : > { %v1052_v2 = vadd.f32 %v1051_v0, %v2490_v13  ;;  %v1053_v47 = vpop.f32.mrb[55].mxu1  ;;  %1502 = vmatmul.mubr.bf16.gmra.mrb[52].mxu0 %v1278_v59  ;;  %v1212_v16 = vmax.f32 %v1048_v62, 0.0 }
 0x1f0   : > { %v1054_v49 = vadd.f32 %v1053_v47, %v2494_v15  ;;  %v1213_v53 = vmax.f32 %v1050_v37, 0.0 }
 0x1f1   : > { %v1214_v18 = vmax.f32 %v1052_v2, 0.0 }
 0x1f2   : > { %v1215_v55 = vmax.f32 %v1054_v49, 0.0 }
 0x1f3   : > { %v1280_v24 = vpack.c.bf16 %v1214_v18, %v1212_v16 }
 0x1f4   : > { %v1281_v26 = vpack.c.bf16 %v1215_v55, %v1213_v53  ;;  %v1057_v63 = vpop.f32.mrb[56].mxu1 }
 0x1f5   : > { %v1058_v1 = vadd.f32 %v1057_v63, %v2490_v13  ;;  %v1059_v33 = vpop.f32.mrb[57].mxu1 }
 0x1f6   : > { %v1060_v41 = vadd.f32 %v1059_v33, %v2494_v15  ;;  %v1061_v43 = vpop.f32.mrb[58].mxu1  ;;  %1509 = vmatprep.mubr.bf16.mxu0 %v1281_v26 }
 0x1f7   : > { %v1062_v32 = vadd.f32 %v1061_v43, %v2490_v13  ;;  %v1063_v35 = vpop.f32.mrb[59].mxu1  ;;  %1510 = vmatmul.mubr.bf16.gmra.mrb[56].mxu0 %v1280_v24  ;;  %v1216_v4 = vmax.f32 %v1058_v1, 0.0 }
 0x1f8   : > { %v1064_v3 = vadd.f32 %v1063_v35, %v2494_v15  ;;  %v1217_v6 = vmax.f32 %v1060_v41, 0.0 }
 0x1f9   : > { %v1218_v5 = vmax.f32 %v1062_v32, 0.0 }
 0x1fa   : > { %v1219_v7 = vmax.f32 %v1064_v3, 0.0 }
 0x1fb   : > { %v1282_v8 = vpack.c.bf16 %v1218_v5, %v1216_v4 }
 0x1fc   : > { %v1283_v9 = vpack.c.bf16 %v1219_v7, %v1217_v6  ;;  %v1067_v10 = vpop.f32.mrb[60].mxu1 }
 0x1fd   : > { %v1068_v11 = vadd.f32 %v1067_v10, %v2490_v13  ;;  %v1069_v12 = vpop.f32.mrb[61].mxu1 }
 0x1fe   : > { %v1070_v14 = vadd.f32 %v1069_v12, %v2494_v15  ;;  %v1071_v17 = vpop.f32.mrb[62].mxu1  ;;  %1517 = vmatprep.mubr.bf16.mxu0 %v1283_v9 }
 0x1ff   : > { %v1072_v19 = vadd.f32 %v1071_v17, %v2490_v13  ;;  %v1073_v20 = vpop.f32.mrb[63].mxu1  ;;  %1518 = vmatmul.mubr.bf16.gmra.mrb[60].mxu0 %v1282_v8  ;;  %v1220_v22 = vmax.f32 %v1068_v11, 0.0 }
 0x200   : > { %v1074_v21 = vadd.f32 %v1073_v20, %v2494_v15  ;;  %v1221_v25 = vmax.f32 %v1070_v14, 0.0 }
 0x201   : > { %v1222_v23 = vmax.f32 %v1072_v19, 0.0 }
 0x202   : > { %v1223_v27 = vmax.f32 %v1074_v21, 0.0 }
 0x203   : > { %v1284_v28 = vpack.c.bf16 %v1222_v23, %v1220_v22 }
 0x204   : > { %v1285_v29 = vpack.c.bf16 %v1223_v27, %v1221_v25  ;;  %v1077_v30 = vpop.f32.mrb[64].mxu1 }
 0x205   : > { %v1078_v31 = vadd.f32 %v1077_v30, %v2490_v13  ;;  %v1079_v34 = vpop.f32.mrb[65].mxu1 }
 0x206   : > { %v1080_v38 = vadd.f32 %v1079_v34, %v2494_v15  ;;  %v1081_v39 = vpop.f32.mrb[66].mxu1  ;;  %1525 = vmatprep.mubr.bf16.mxu0 %v1285_v29 }
 0x207   : > { %v1082_v40 = vadd.f32 %v1081_v39, %v2490_v13  ;;  %v1083_v42 = vpop.f32.mrb[67].mxu1  ;;  %1526 = vmatmul.mubr.bf16.gmra.mrb[64].mxu0 %v1284_v28  ;;  %v1224_v45 = vmax.f32 %v1078_v31, 0.0 }
 0x208   : > { %v1084_v44 = vadd.f32 %v1083_v42, %v2494_v15  ;;  %v1225_v48 = vmax.f32 %v1080_v38, 0.0 }
 0x209   : > { %v1226_v46 = vmax.f32 %v1082_v40, 0.0 }
 0x20a   : > { %v1227_v50 = vmax.f32 %v1084_v44, 0.0 }
 0x20b   : > { %v1286_v51 = vpack.c.bf16 %v1226_v46, %v1224_v45 }
 0x20c   : > { %v1287_v52 = vpack.c.bf16 %v1227_v50, %v1225_v48  ;;  %v1087_v54 = vpop.f32.mrb[68].mxu1 }
 0x20d   : > { %v1088_v56 = vadd.f32 %v1087_v54, %v2490_v13  ;;  %v1089_v57 = vpop.f32.mrb[69].mxu1 }
 0x20e   : > { %v1090_v58 = vadd.f32 %v1089_v57, %v2494_v15  ;;  %v1091_v59 = vpop.f32.mrb[70].mxu1  ;;  %1533 = vmatprep.mubr.bf16.mxu0 %v1287_v52 }
 0x20f   : > { %v1092_v60 = vadd.f32 %v1091_v59, %v2490_v13  ;;  %v1093_v61 = vpop.f32.mrb[71].mxu1  ;;  %1534 = vmatmul.mubr.bf16.gmra.mrb[68].mxu0 %v1286_v51  ;;  %v1228_v36 = vmax.f32 %v1088_v56, 0.0 }
 0x210   : > { %v1094_v62 = vadd.f32 %v1093_v61, %v2494_v15  ;;  %v1229_v0 = vmax.f32 %v1090_v58, 0.0 }
 0x211   : > { %v1230_v37 = vmax.f32 %v1092_v60, 0.0 }
 0x212   : > { %v1231_v2 = vmax.f32 %v1094_v62, 0.0 }
 0x213   : > { %v1288_v47 = vpack.c.bf16 %v1230_v37, %v1228_v36 }
 0x214   : > { %v1289_v49 = vpack.c.bf16 %v1231_v2, %v1229_v0  ;;  %v1097_v16 = vpop.f32.mrb[72].mxu1 }
 0x215   : > { %v1098_v18 = vadd.f32 %v1097_v16, %v2490_v13  ;;  %v1099_v53 = vpop.f32.mrb[73].mxu1 }
 0x216   : > { %v1100_v55 = vadd.f32 %v1099_v53, %v2494_v15  ;;  %v1101_v24 = vpop.f32.mrb[74].mxu1  ;;  %1541 = vmatprep.mubr.bf16.mxu0 %v1289_v49 }
 0x217   : > { %v1102_v26 = vadd.f32 %v1101_v24, %v2490_v13  ;;  %v1103_v63 = vpop.f32.mrb[75].mxu1  ;;  %1542 = vmatmul.mubr.bf16.gmra.mrb[72].mxu0 %v1288_v47  ;;  %v1232_v33 = vmax.f32 %v1098_v18, 0.0 }
 0x218   : > { %v1104_v1 = vadd.f32 %v1103_v63, %v2494_v15  ;;  %v1233_v43 = vmax.f32 %v1100_v55, 0.0 }
 0x219   : > { %v1234_v41 = vmax.f32 %v1102_v26, 0.0 }
 0x21a   : > { %v1235_v32 = vmax.f32 %v1104_v1, 0.0 }
 0x21b   : > { %v1290_v35 = vpack.c.bf16 %v1234_v41, %v1232_v33 }
 0x21c   : > { %v1291_v3 = vpack.c.bf16 %v1235_v32, %v1233_v43  ;;  %v1107_v4 = vpop.f32.mrb[76].mxu1 }
 0x21d   : > { %v1108_v5 = vadd.f32 %v1107_v4, %v2490_v13  ;;  %v1109_v6 = vpop.f32.mrb[77].mxu1 }
 0x21e   : > { %v1110_v7 = vadd.f32 %v1109_v6, %v2494_v15  ;;  %v1111_v8 = vpop.f32.mrb[78].mxu1  ;;  %1549 = vmatprep.mubr.bf16.mxu0 %v1291_v3 }
 0x21f   : > { %v1112_v9 = vadd.f32 %v1111_v8, %v2490_v13  ;;  %v1113_v10 = vpop.f32.mrb[79].mxu1  ;;  %1550 = vmatmul.mubr.bf16.gmra.mrb[76].mxu0 %v1290_v35  ;;  %v1236_v12 = vmax.f32 %v1108_v5, 0.0 }
 0x220   : > { %v1114_v11 = vadd.f32 %v1113_v10, %v2494_v15  ;;  %v1237_v17 = vmax.f32 %v1110_v7, 0.0 }
 0x221   : > { %v1238_v14 = vmax.f32 %v1112_v9, 0.0 }
 0x222   : > { %v1239_v19 = vmax.f32 %v1114_v11, 0.0 }
 0x223   : > { %v1292_v20 = vpack.c.bf16 %v1238_v14, %v1236_v12 }
 0x224   : > { %v1293_v21 = vpack.c.bf16 %v1239_v19, %v1237_v17  ;;  %v1117_v22 = vpop.f32.mrb[80].mxu1 }
 0x225   : > { %v1118_v23 = vadd.f32 %v1117_v22, %v2490_v13  ;;  %v1119_v25 = vpop.f32.mrb[81].mxu1 }
 0x226   : > { %v1120_v27 = vadd.f32 %v1119_v25, %v2494_v15  ;;  %v1121_v28 = vpop.f32.mrb[82].mxu1  ;;  %1557 = vmatprep.mubr.bf16.mxu0 %v1293_v21 }
 0x227   : > { %v1122_v29 = vadd.f32 %v1121_v28, %v2490_v13  ;;  %v1123_v30 = vpop.f32.mrb[83].mxu1  ;;  %1558 = vmatmul.mubr.bf16.gmra.mrb[80].mxu0 %v1292_v20  ;;  %v1240_v34 = vmax.f32 %v1118_v23, 0.0 }
 0x228   : > { %v1124_v31 = vadd.f32 %v1123_v30, %v2494_v15  ;;  %v1241_v39 = vmax.f32 %v1120_v27, 0.0 }
 0x229   : > { %v1242_v38 = vmax.f32 %v1122_v29, 0.0 }
 0x22a   : > { %v1243_v40 = vmax.f32 %v1124_v31, 0.0 }
 0x22b   : > { %v1294_v42 = vpack.c.bf16 %v1242_v38, %v1240_v34 }
 0x22c   : > { %v1295_v44 = vpack.c.bf16 %v1243_v40, %v1241_v39  ;;  %v1127_v45 = vpop.f32.mrb[84].mxu1 }
 0x22d   : > { %v1128_v46 = vadd.f32 %v1127_v45, %v2490_v13  ;;  %v1129_v48 = vpop.f32.mrb[85].mxu1 }
 0x22e   : > { %v1130_v50 = vadd.f32 %v1129_v48, %v2494_v15  ;;  %v1131_v51 = vpop.f32.mrb[86].mxu1  ;;  %1565 = vmatprep.mubr.bf16.mxu0 %v1295_v44 }
 0x22f   : > { %v1132_v52 = vadd.f32 %v1131_v51, %v2490_v13  ;;  %v1133_v54 = vpop.f32.mrb[87].mxu1  ;;  %1566 = vmatmul.mubr.bf16.gmra.mrb[84].mxu0 %v1294_v42  ;;  %v1244_v57 = vmax.f32 %v1128_v46, 0.0 }
 0x230   : > { %v1134_v56 = vadd.f32 %v1133_v54, %v2494_v15  ;;  %v1245_v59 = vmax.f32 %v1130_v50, 0.0 }
 0x231   : > { %v1246_v58 = vmax.f32 %v1132_v52, 0.0 }
 0x232   : > { %v1247_v60 = vmax.f32 %v1134_v56, 0.0 }
 0x233   : > { %v1296_v61 = vpack.c.bf16 %v1246_v58, %v1244_v57 }
 0x234   : > { %v1297_v62 = vpack.c.bf16 %v1247_v60, %v1245_v59  ;;  %v1137_v36 = vpop.f32.mrb[88].mxu1 }
 0x235   : > { %v1138_v37 = vadd.f32 %v1137_v36, %v2490_v13  ;;  %v1139_v0 = vpop.f32.mrb[89].mxu1 }
 0x236   : > { %v1140_v2 = vadd.f32 %v1139_v0, %v2494_v15  ;;  %v1141_v47 = vpop.f32.mrb[90].mxu1  ;;  %1573 = vmatprep.mubr.bf16.mxu0 %v1297_v62 }
 0x237   : > { %v1142_v49 = vadd.f32 %v1141_v47, %v2490_v13  ;;  %v1143_v16 = vpop.f32.mrb[91].mxu1  ;;  %1574 = vmatmul.mubr.bf16.gmra.mrb[88].mxu0 %v1296_v61  ;;  %v1248_v53 = vmax.f32 %v1138_v37, 0.0 }
 0x238   : > { %v1144_v18 = vadd.f32 %v1143_v16, %v2494_v15  ;;  %v1249_v24 = vmax.f32 %v1140_v2, 0.0 }
 0x239   : > { %v1250_v55 = vmax.f32 %v1142_v49, 0.0 }
 0x23a   : > { %v1251_v26 = vmax.f32 %v1144_v18, 0.0 }
 0x23b   : > { %v1298_v63 = vpack.c.bf16 %v1250_v55, %v1248_v53 }
 0x23c   : > { %v1299_v1 = vpack.c.bf16 %v1251_v26, %v1249_v24  ;;  %v1147_v33 = vpop.f32.mrb[92].mxu1 }
 0x23d   : > { %v1148_v41 = vadd.f32 %v1147_v33, %v2490_v13  ;;  %v1149_v43 = vpop.f32.mrb[93].mxu1 }
 0x23e   : > { %v1150_v32 = vadd.f32 %v1149_v43, %v2494_v15  ;;  %v1151_v35 = vpop.f32.mrb[94].mxu1  ;;  %1581 = vmatprep.mubr.bf16.mxu0 %v1299_v1 }
 0x23f   : > { %v1152_v3 = vadd.f32 %v1151_v35, %v2490_v13  ;;  %v1153_v4 = vpop.f32.mrb[95].mxu1  ;;  %1582 = vmatmul.mubr.bf16.gmra.mrb[92].mxu0 %v1298_v63  ;;  %v1252_v6 = vmax.f32 %v1148_v41, 0.0 }
 0x240   : > { %v1154_v5 = vadd.f32 %v1153_v4, %v2494_v15  ;;  %v1253_v8 = vmax.f32 %v1150_v32, 0.0 }
 0x241   : > { %v1254_v7 = vmax.f32 %v1152_v3, 0.0 }
 0x242   : > { %v1255_v9 = vmax.f32 %v1154_v5, 0.0 }
 0x243   : > { %v1300_v10 = vpack.c.bf16 %v1254_v7, %v1252_v6  ;;  %v2578_v6 = vld [vmem:[%s2716_s6] ss:$0 sm:$0xff] }
 0x244   : > { %v1301_v11 = vpack.c.bf16 %v1255_v9, %v1253_v8  ;;  %v1157_v12 = vpop.f32.mrb[96].mxu1 }
 0x245   : > { %v1158_v14 = vadd.f32 %v1157_v12, %v2490_v13  ;;  %v1159_v17 = vpop.f32.mrb[97].mxu1 }
 0x246   : > { %v1160_v19 = vadd.f32 %v1159_v17, %v2494_v15  ;;  %v1161_v20 = vpop.f32.mrb[98].mxu1  ;;  %1589 = vmatprep.mubr.bf16.mxu0 %v1301_v11 }
 0x247   : > { %v1162_v21 = vadd.f32 %v1161_v20, %v2490_v13  ;;  %v1163_v22 = vpop.f32.mrb[99].mxu1  ;;  %1590 = vmatmul.mubr.bf16.gmra.mrb[96].mxu0 %v1300_v10  ;;  %v1256_v25 = vmax.f32 %v1158_v14, 0.0 }
 0x248   : > { %v1164_v23 = vadd.f32 %v1163_v22, %v2494_v15  ;;  %v1257_v28 = vmax.f32 %v1160_v19, 0.0 }
 0x249   : > { %v1258_v27 = vmax.f32 %v1162_v21, 0.0 }
 0x24a   : > { %v1259_v29 = vmax.f32 %v1164_v23, 0.0 }
 0x24b   : > { %v1302_v30 = vpack.c.bf16 %v1258_v27, %v1256_v25 }
 0x24c   : > { %v1303_v31 = vpack.c.bf16 %v1259_v29, %v1257_v28  ;;  %v1167_v34 = vpop.f32.mrb[100].mxu1 }
 0x24d   : > { %v1168_v38 = vadd.f32 %v1167_v34, %v2490_v13  ;;  %v1169_v39 = vpop.f32.mrb[101].mxu1 }
 0x24e   : > { %v1170_v40 = vadd.f32 %v1169_v39, %v2494_v15  ;;  %v1171_v42 = vpop.f32.mrb[102].mxu1  ;;  %1597 = vmatprep.mubr.bf16.mxu0 %v1303_v31 }
 0x24f   : > { %v1172_v44 = vadd.f32 %v1171_v42, %v2490_v13  ;;  %v1173_v45 = vpop.f32.mrb[103].mxu1  ;;  %1598 = vmatmul.mubr.bf16.gmra.mrb[100].mxu0 %v1302_v30  ;;  %v1260_v48 = vmax.f32 %v1168_v38, 0.0 }
 0x250   : > { %v1174_v46 = vadd.f32 %v1173_v45, %v2494_v15  ;;  %v1261_v51 = vmax.f32 %v1170_v40, 0.0 }
 0x251   : > { %v1262_v50 = vmax.f32 %v1172_v44, 0.0 }
 0x252   : > { %v1263_v52 = vmax.f32 %v1174_v46, 0.0 }
 0x253   : > { %v1304_v54 = vpack.c.bf16 %v1262_v50, %v1260_v48 }
 0x254   : > { %v1305_v56 = vpack.c.bf16 %v1263_v52, %v1261_v51  ;;  %v1177_v57 = vpop.f32.mrb[104].mxu1 }
 0x255   : > { %v1178_v58 = vadd.f32 %v1177_v57, %v2490_v13  ;;  %v1179_v59 = vpop.f32.mrb[105].mxu1 }
 0x256   : > { %v1180_v60 = vadd.f32 %v1179_v59, %v2494_v15  ;;  %v1181_v61 = vpop.f32.mrb[106].mxu1  ;;  %1605 = vmatprep.mubr.bf16.mxu0 %v1305_v56 }
 0x257   : > { %v1182_v62 = vadd.f32 %v1181_v61, %v2490_v13  ;;  %v1183_v36 = vpop.f32.mrb[107].mxu1  ;;  %1606 = vmatmul.mubr.bf16.gmra.mrb[104].mxu0 %v1304_v54  ;;  %v1264_v0 = vmax.f32 %v1178_v58, 0.0 }
 0x258   : > { %v1184_v37 = vadd.f32 %v1183_v36, %v2494_v15  ;;  %v1265_v47 = vmax.f32 %v1180_v60, 0.0 }
 0x259   : > { %v1266_v2 = vmax.f32 %v1182_v62, 0.0 }
 0x25a   : > { %v1267_v49 = vmax.f32 %v1184_v37, 0.0 }
 0x25b   : > { %v1306_v16 = vpack.c.bf16 %v1266_v2, %v1264_v0 }
 0x25c   : > { %v1307_v18 = vpack.c.bf16 %v1267_v49, %v1265_v47  ;;  %v1187_v53 = vpop.f32.mrb[108].mxu1 }
 0x25d   : > { %v1188_v55 = vadd.f32 %v1187_v53, %v2490_v13  ;;  %v1189_v24 = vpop.f32.mrb[109].mxu1 }
 0x25e   : > { %v1190_v26 = vadd.f32 %v1189_v24, %v2494_v15  ;;  %v1191_v63 = vpop.f32.mrb[110].mxu1  ;;  %1613 = vmatprep.mubr.bf16.mxu0 %v1307_v18 }
 0x25f   : > { %v1192_v1 = vadd.f32 %v1191_v63, %v2490_v13  ;;  %v1193_v33 = vpop.f32.mrb[111].mxu1  ;;  %1614 = vmatmul.mubr.bf16.gmra.mrb[108].mxu0 %v1306_v16  ;;  %v1268_v43 = vmax.f32 %v1188_v55, 0.0 }
 0x260   : > { %v1194_v41 = vadd.f32 %v1193_v33, %v2494_v15  ;;  %v1269_v35 = vmax.f32 %v1190_v26, 0.0 }
 0x261   : > { %v1270_v32 = vmax.f32 %v1192_v1, 0.0 }
 0x262   : > { %v1271_v3 = vmax.f32 %v1194_v41, 0.0 }
 0x263   : > { %v1308_v4 = vpack.c.bf16 %v1270_v32, %v1268_v43 }
 0x264   : > { %v1309_v5 = vpack.c.bf16 %v1271_v3, %v1269_v35 }
 0x266   : > { %1621 = vmatprep.mubr.bf16.mxu0 %v1309_v5 }
 0x267   : > { %1622 = vmatmul.mubr.bf16.gmra.mrb[112].mxu0 %v1308_v4 }
 0x2aa   : > { %v1479_v13 = vpop.f32.mrb[40].mxu0 }
 0x2ab   : > { %v1480_v7 = vadd.f32 %v2578_v6, %v1479_v13  ;;  %v1481_v15 = vpop.f32.mrb[41].mxu0 }
 0x2ac   : > { %v1482_v8 = vpop.f32.mrb[42].mxu0 }
 0x2ad   : > { %1630 = vst [vmem:[%s2581_s13] sm:$0xff] %v1480_v7  ;;  %v1483_v9 = vadd.f32 %v2578_v6, %v1482_v8  ;;  %v1484_v10 = vpop.f32.mrb[43].mxu0 }
 0x2af   : > { %1631 = vst [vmem:[%s2581_s13 + $0x8] sm:$0xff] %v1483_v9 }
 0x2b2   : > { %v1487_v11 = vpop.f32.mrb[44].mxu0 }
 0x2b3   : > { %v1488_v12 = vadd.f32 %v2578_v6, %v1487_v11  ;;  %v1489_v14 = vpop.f32.mrb[45].mxu0 }
 0x2b4   : > { %v1490_v17 = vpop.f32.mrb[46].mxu0 }
 0x2b5   : > { %1632 = vst [vmem:[%s2581_s13 + $0x10] sm:$0xff] %v1488_v12  ;;  %v1491_v19 = vadd.f32 %v2578_v6, %v1490_v17  ;;  %v1492_v20 = vpop.f32.mrb[47].mxu0 }
 0x2b7   : > { %1633 = vst [vmem:[%s2581_s13 + $0x18] sm:$0xff] %v1491_v19 }
 0x2ba   : > { %v1495_v21 = vpop.f32.mrb[48].mxu0 }
 0x2bb   : > { %v1496_v22 = vadd.f32 %v2578_v6, %v1495_v21  ;;  %v1497_v23 = vpop.f32.mrb[49].mxu0 }
 0x2bc   : > { %v1498_v25 = vpop.f32.mrb[50].mxu0 }
 0x2bd   : > { %1634 = vst [vmem:[%s2581_s13 + $0x20] sm:$0xff] %v1496_v22  ;;  %v1499_v27 = vadd.f32 %v2578_v6, %v1498_v25  ;;  %v1500_v28 = vpop.f32.mrb[51].mxu0 }
 0x2bf   : > { %1635 = vst [vmem:[%s2581_s13 + $0x28] sm:$0xff] %v1499_v27 }
 0x2c2   : > { %v1503_v29 = vpop.f32.mrb[52].mxu0 }
 0x2c3   : > { %v1504_v30 = vadd.f32 %v2578_v6, %v1503_v29  ;;  %v1505_v31 = vpop.f32.mrb[53].mxu0 }
 0x2c4   : > { %v1506_v34 = vpop.f32.mrb[54].mxu0 }
 0x2c5   : > { %1636 = vst [vmem:[%s2581_s13 + $0x30] sm:$0xff] %v1504_v30  ;;  %v1507_v38 = vadd.f32 %v2578_v6, %v1506_v34  ;;  %v1508_v39 = vpop.f32.mrb[55].mxu0 }
 0x2c7   : > { %1637 = vst [vmem:[%s2581_s13 + $0x38] sm:$0xff] %v1507_v38 }
 0x2ca   : > { %v1511_v40 = vpop.f32.mrb[56].mxu0 }
 0x2cb   : > { %v1512_v42 = vadd.f32 %v2578_v6, %v1511_v40  ;;  %v1513_v44 = vpop.f32.mrb[57].mxu0 }
 0x2cc   : > { %v1514_v45 = vpop.f32.mrb[58].mxu0 }
 0x2cd   : > { %1638 = vst [vmem:[%s2581_s13 + $0x40] sm:$0xff] %v1512_v42  ;;  %v1515_v46 = vadd.f32 %v2578_v6, %v1514_v45  ;;  %v1516_v48 = vpop.f32.mrb[59].mxu0 }
 0x2cf   : > { %1639 = vst [vmem:[%s2581_s13 + $0x48] sm:$0xff] %v1515_v46 }
 0x2d2   : > { %v1519_v50 = vpop.f32.mrb[60].mxu0 }
 0x2d3   : > { %v1520_v51 = vadd.f32 %v2578_v6, %v1519_v50  ;;  %v1521_v52 = vpop.f32.mrb[61].mxu0 }
 0x2d4   : > { %v1522_v54 = vpop.f32.mrb[62].mxu0 }
 0x2d5   : > { %1640 = vst [vmem:[%s2581_s13 + $0x50] sm:$0xff] %v1520_v51  ;;  %v1523_v56 = vadd.f32 %v2578_v6, %v1522_v54  ;;  %v1524_v57 = vpop.f32.mrb[63].mxu0 }
 0x2d7   : > { %1641 = vst [vmem:[%s2581_s13 + $0x58] sm:$0xff] %v1523_v56 }
 0x2da   : > { %v1527_v58 = vpop.f32.mrb[64].mxu0 }
 0x2db   : > { %v1528_v59 = vadd.f32 %v2578_v6, %v1527_v58  ;;  %v1529_v60 = vpop.f32.mrb[65].mxu0 }
 0x2dc   : > { %v1530_v61 = vpop.f32.mrb[66].mxu0 }
 0x2dd   : > { %1642 = vst [vmem:[%s2581_s13 + $0x60] sm:$0xff] %v1528_v59  ;;  %v1531_v62 = vadd.f32 %v2578_v6, %v1530_v61  ;;  %v1532_v36 = vpop.f32.mrb[67].mxu0 }
 0x2df   : > { %1643 = vst [vmem:[%s2581_s13 + $0x68] sm:$0xff] %v1531_v62 }
 0x2e2   : > { %v1535_v37 = vpop.f32.mrb[68].mxu0 }
 0x2e3   : > { %v1536_v0 = vadd.f32 %v2578_v6, %v1535_v37  ;;  %v1537_v2 = vpop.f32.mrb[69].mxu0 }
 0x2e4   : > { %v1538_v47 = vpop.f32.mrb[70].mxu0 }
 0x2e5   : > { %1644 = vst [vmem:[%s2581_s13 + $0x70] sm:$0xff] %v1536_v0  ;;  %v1539_v49 = vadd.f32 %v2578_v6, %v1538_v47  ;;  %v1540_v16 = vpop.f32.mrb[71].mxu0 }
 0x2e7   : > { %1645 = vst [vmem:[%s2581_s13 + $0x78] sm:$0xff] %v1539_v49 }
 0x2ea   : > { %v1543_v18 = vpop.f32.mrb[72].mxu0 }
 0x2eb   : > { %v1544_v53 = vadd.f32 %v2578_v6, %v1543_v18  ;;  %v1545_v55 = vpop.f32.mrb[73].mxu0 }
 0x2ec   : > { %v1546_v24 = vpop.f32.mrb[74].mxu0 }
 0x2ed   : > { %1646 = vst [vmem:[%s2581_s13 + $0x80] sm:$0xff] %v1544_v53  ;;  %v1547_v26 = vadd.f32 %v2578_v6, %v1546_v24  ;;  %v1548_v63 = vpop.f32.mrb[75].mxu0 }
 0x2ef   : > { %1647 = vst [vmem:[%s2581_s13 + $0x88] sm:$0xff] %v1547_v26 }
 0x2f2   : > { %v1551_v1 = vpop.f32.mrb[76].mxu0 }
 0x2f3   : > { %v1552_v33 = vadd.f32 %v2578_v6, %v1551_v1  ;;  %v1553_v41 = vpop.f32.mrb[77].mxu0 }
 0x2f4   : > { %v1554_v43 = vpop.f32.mrb[78].mxu0 }
 0x2f5   : > { %1648 = vst [vmem:[%s2581_s13 + $0x90] sm:$0xff] %v1552_v33  ;;  %v1555_v32 = vadd.f32 %v2578_v6, %v1554_v43  ;;  %v1556_v35 = vpop.f32.mrb[79].mxu0 }
 0x2f7   : > { %1649 = vst [vmem:[%s2581_s13 + $0x98] sm:$0xff] %v1555_v32 }
 0x2fa   : > { %v1559_v3 = vpop.f32.mrb[80].mxu0 }
 0x2fb   : > { %v1560_v4 = vadd.f32 %v2578_v6, %v1559_v3  ;;  %v1561_v5 = vpop.f32.mrb[81].mxu0 }
 0x2fc   : > { %v1562_v13 = vpop.f32.mrb[82].mxu0 }
 0x2fd   : > { %1650 = vst [vmem:[%s2581_s13 + $0xa0] sm:$0xff] %v1560_v4  ;;  %v1563_v7 = vadd.f32 %v2578_v6, %v1562_v13  ;;  %v1564_v15 = vpop.f32.mrb[83].mxu0 }
 0x2ff   : > { %1651 = vst [vmem:[%s2581_s13 + $0xa8] sm:$0xff] %v1563_v7 }
 0x302   : > { %v1567_v8 = vpop.f32.mrb[84].mxu0 }
 0x303   : > { %v1568_v9 = vadd.f32 %v2578_v6, %v1567_v8  ;;  %v1569_v10 = vpop.f32.mrb[85].mxu0 }
 0x304   : > { %v1570_v11 = vpop.f32.mrb[86].mxu0 }
 0x305   : > { %1652 = vst [vmem:[%s2581_s13 + $0xb0] sm:$0xff] %v1568_v9  ;;  %v1571_v12 = vadd.f32 %v2578_v6, %v1570_v11  ;;  %v1572_v14 = vpop.f32.mrb[87].mxu0 }
 0x307   : > { %1653 = vst [vmem:[%s2581_s13 + $0xb8] sm:$0xff] %v1571_v12 }
 0x30a   : > { %v1575_v17 = vpop.f32.mrb[88].mxu0 }
 0x30b   : > { %v1576_v19 = vadd.f32 %v2578_v6, %v1575_v17  ;;  %v1577_v20 = vpop.f32.mrb[89].mxu0 }
 0x30c   : > { %v1578_v21 = vpop.f32.mrb[90].mxu0 }
 0x30d   : > { %1654 = vst [vmem:[%s2581_s13 + $0xc0] sm:$0xff] %v1576_v19  ;;  %v1579_v22 = vadd.f32 %v2578_v6, %v1578_v21  ;;  %v1580_v23 = vpop.f32.mrb[91].mxu0 }
 0x30f   : > { %1655 = vst [vmem:[%s2581_s13 + $0xc8] sm:$0xff] %v1579_v22 }
 0x312   : > { %v1583_v25 = vpop.f32.mrb[92].mxu0 }
 0x313   : > { %v1584_v27 = vadd.f32 %v2578_v6, %v1583_v25  ;;  %v1585_v28 = vpop.f32.mrb[93].mxu0 }
 0x314   : > { %v1586_v29 = vpop.f32.mrb[94].mxu0 }
 0x315   : > { %1656 = vst [vmem:[%s2581_s13 + $0xd0] sm:$0xff] %v1584_v27  ;;  %v1587_v30 = vadd.f32 %v2578_v6, %v1586_v29  ;;  %v1588_v31 = vpop.f32.mrb[95].mxu0 }
 0x317   : > { %1657 = vst [vmem:[%s2581_s13 + $0xd8] sm:$0xff] %v1587_v30 }
 0x31a   : > { %v1591_v34 = vpop.f32.mrb[96].mxu0 }
 0x31b   : > { %v1592_v38 = vadd.f32 %v2578_v6, %v1591_v34  ;;  %v1593_v39 = vpop.f32.mrb[97].mxu0 }
 0x31c   : > { %v1594_v40 = vpop.f32.mrb[98].mxu0 }
 0x31d   : > { %1658 = vst [vmem:[%s2581_s13 + $0xe0] sm:$0xff] %v1592_v38  ;;  %v1595_v42 = vadd.f32 %v2578_v6, %v1594_v40  ;;  %v1596_v44 = vpop.f32.mrb[99].mxu0 }
 0x31f   : > { %1659 = vst [vmem:[%s2581_s13 + $0xe8] sm:$0xff] %v1595_v42 }
 0x322   : > { %v1599_v45 = vpop.f32.mrb[100].mxu0 }
 0x323   : > { %v1600_v46 = vadd.f32 %v2578_v6, %v1599_v45  ;;  %v1601_v48 = vpop.f32.mrb[101].mxu0 }
 0x324   : > { %v1602_v50 = vpop.f32.mrb[102].mxu0 }
 0x325   : > { %1660 = vst [vmem:[%s2581_s13 + $0xf0] sm:$0xff] %v1600_v46  ;;  %v1603_v51 = vadd.f32 %v2578_v6, %v1602_v50  ;;  %v1604_v52 = vpop.f32.mrb[103].mxu0 }
 0x327   : > { %1661 = vst [vmem:[%s2581_s13 + $0xf8] sm:$0xff] %v1603_v51 }
 0x32a   : > { %v1607_v54 = vpop.f32.mrb[104].mxu0 }
 0x32b   : > { %v1608_v56 = vadd.f32 %v2578_v6, %v1607_v54  ;;  %v1609_v57 = vpop.f32.mrb[105].mxu0 }
 0x32c   : > { %v1610_v58 = vpop.f32.mrb[106].mxu0 }
 0x32d   : > { %1662 = vst [vmem:[%s2581_s13 + $0x100] sm:$0xff] %v1608_v56  ;;  %v1611_v59 = vadd.f32 %v2578_v6, %v1610_v58  ;;  %v1612_v60 = vpop.f32.mrb[107].mxu0 }
 0x32f   : > { %1663 = vst [vmem:[%s2581_s13 + $0x108] sm:$0xff] %v1611_v59 }
 0x332   : > { %v1615_v61 = vpop.f32.mrb[108].mxu0 }
 0x333   : > { %v1616_v62 = vadd.f32 %v2578_v6, %v1615_v61  ;;  %v1617_v36 = vpop.f32.mrb[109].mxu0 }
 0x334   : > { %v1618_v37 = vpop.f32.mrb[110].mxu0 }
 0x335   : > { %1664 = vst [vmem:[%s2581_s13 + $0x110] sm:$0xff] %v1616_v62  ;;  %v1619_v0 = vadd.f32 %v2578_v6, %v1618_v37  ;;  %v1620_v2 = vpop.f32.mrb[111].mxu0 }
 0x337   : > { %1665 = vst [vmem:[%s2581_s13 + $0x118] sm:$0xff] %v1619_v0 }
 0x33a   : > { %v1623_v47 = vpop.f32.mrb[112].mxu0 }
 0x33b   : > { %v1624_v49 = vadd.f32 %v2578_v6, %v1623_v47  ;;  %v1625_v16 = vpop.f32.mrb[113].mxu0 }
 0x33c   : > { %v1626_v18 = vpop.f32.mrb[114].mxu0 }
 0x33d   : > { %1666 = vst [vmem:[%s2581_s13 + $0x120] sm:$0xff] %v1624_v49  ;;  %v1627_v53 = vadd.f32 %v2578_v6, %v1626_v18  ;;  %v1628_v55 = vpop.f32.mrb[115].mxu0 }
 0x33f   : > { %1667 = vst [vmem:[%s2581_s13 + $0x128] sm:$0xff] %v1627_v53 }
 0x340   : > { %1955 = shalt.err (!%p1952_p3)
}
 0x341   : > { %s1956_s18 = scalar_lea.hbm %s2660_s9, 4864  ;;  %s1960_s21 = scalar_lea.hbm %s2717_s7, 9728 }
 0x342   : > { %p1957_p4 = scmp.ne.s32.totalorder %s2660_s9, %s1956_s18  ;;  %p1961_p9 = scmp.lt.u32.totalorder %s2660_s9, %s2717_s7 }
 0x343   : > { %p1962_p10 = scmp.lt.u32.totalorder %s1960_s21, %s1956_s18  ;;  %p1964_p12 = scmp.lt.u32.totalorder %s1956_s18, %s2660_s9 }
 0x344   : > { %p1958_p7 = pnand %p1957_p4, %p2088_p5 }
 0x345   : > { %p1963_p11 = por %p1962_p10, %p1961_p9 }
 0x346   : > { %p1959_p8 = pneg %p1958_p7 }
 0x347   : > { %p1965_p13 = por %p1964_p12, %p1963_p11 }
 0x349   : > { %p1966_p0 = pnand %p1965_p13, %p1959_p8 }
 0x34b   : > { %1969 = shalt.err (!%p1966_p0)
}
 0x34c   : > { %s2008_s29 = smov 128   ;;  %s2009_s8 = smov 8  }
 0x34d   : > { %1830 = dma.vmem_to_hbm [thread:$0]  (%p2088_p5), %s2662_s23, 4864, %s2660_s9, %s2669_s28, %s2008_s29, %s2008_s29, %s2009_s8  }
 0x34e PF: > { %p1836_p1 = scmp.ge.s32.totalorder %s2004_s27, 2  ;;  %s1697_s14 = sand.u32 1, %s1992_s24  }
 0x34f   : > { %s1698_s15 = scalar_lea.sflag [#allocation3], %s1697_s14 }
 0x350   : > { %p1833_p2 = pnand %p1836_p1, %p2092_p6 }
 0x352   : > { %1987 = dma.done.wait (!%p1833_p2), %s1698_s15, 4864  }
 0x353   : > { %1989 = vsyncadd (!%p1833_p2), %s1698_s15, 4294962432  ;;  %p17_p3 = scmp.ge.s32.totalorder %s2075_s30, 4   ;;  %s2720_s24 = smov %s1996_s25 }
 0x354   : > { %s2721_s25 = smov %s2000_s26  ;;  %s2722_s26 = smov %s2086_s10 }
 0x355   : > { %s2723_s27 = smov %s2075_s30  ;;  %19 = sbr.rel (!%p17_p3) target bundleno = 3 (0x3), region = 83 }
 0x35c   :  { %1703 = vsyncpa [#allocation3], 1 }
 0x35d   :  { %1705 = vsyncpa [#allocation3 + $0x1], 1 }

</bundles_post_ra>
